<compile_context>
chip_gen: v7x
topology: tpu7x:2x2x1
jax: 0.10.0
libtpu: 0.0.40
codegen_flags: <defaults>
</compile_context>

<pallas_src>
import functools

import jax
import jax.numpy as jnp
from jax.experimental import pallas as pl
from jax.experimental.pallas import tpu as pltpu


# ---------------------------------------------------------------------------
# Fused kernel.
#   PyTorch GRU gate order (r, z, n):
#     r = sigmoid(x W_ir^T + b_ir + h W_hr^T + b_hr)
#     z = sigmoid(x W_iz^T + b_iz + h W_hz^T + b_hz)
#     n = tanh  (x W_in^T + b_in + r * (h W_hn^T + b_hn))
#     h = (1 - z) * n + z * h
# ---------------------------------------------------------------------------
def _gru_reg_fused_kernel(
    x_ref,        # (S*B, I)  bf16   row = t*B + b
    wi0_ref,      # (I, 3H)   bf16   layer-0 input weights, gates r|z|n on lanes
    bi0_ref,      # (1, 3H)   f32    [b_ir+b_hr | b_iz+b_hz | b_in]
    wh0_ref,      # (H, 3H)   bf16   layer-0 hidden weights, gates r|z|n
    bhn0_ref,     # (1, H)    f32    b_hn (layer 0)
    w1_ref,       # (2H, 4H)  bf16   layer-1 stacked [x;h] weights: r|z|n_x|n_h
    b1_ref,       # (1, 4H)   f32    [b_ir+b_hr | b_iz+b_hz | b_in | b_hn]
    fcw_ref,      # (S, H, O) bf16   fc_w.T.reshape(S, H, O)
    fcb_ref,      # (1, O)    f32
    out_ref,      # (B, O)    f32
    *, S, B, H,
):
    f32 = jnp.float32
    bf16 = jnp.bfloat16

    # Hoisted layer-0 input projection over the whole sequence (one matmul,
    # off the serial recurrence chain): (S*B, 3H).
    gi0 = (jnp.dot(x_ref[...], wi0_ref[...], preferred_element_type=f32)
           + bi0_ref[...])

    wh0 = wh0_ref[...]      # (H, 3H)  bf16
    bhn0 = bhn0_ref[...]    # (1, H)   f32
    w1 = w1_ref[...]        # (2H, 4H) bf16
    b1 = b1_ref[...]        # (1, 4H)  f32
    fcw = fcw_ref[...]      # (S, H, O) bf16

    h0 = jnp.zeros((B, H), f32)
    h1 = jnp.zeros((B, H), f32)
    fc_acc = jnp.zeros((B, fcw.shape[-1]), f32)

    # Fully unrolled: S is small and static; hidden states stay in vregs and
    # the two layers' dependence chains overlap across iterations.
    for t in range(S):
        lo = t * B                                    # 8-sublane aligned (B=8)

        # ---- layer 0, step t: ONE (B,H)@(H,3H) matmul on the serial chain
        gh0 = jnp.dot(h0.astype(bf16), wh0, preferred_element_type=f32)
        g0 = gi0[lo:lo + B]                           # (B, 3H)
        r0 = jax.nn.sigmoid(g0[:, 0:H] + gh0[:, 0:H])
        z0 = jax.nn.sigmoid(g0[:, H:2 * H] + gh0[:, H:2 * H])
        n0 = jnp.tanh(g0[:, 2 * H:3 * H] + r0 * (gh0[:, 2 * H:3 * H] + bhn0))
        h0 = (1.0 - z0) * n0 + z0 * h0

        # ---- layer 1, step t: ONE (B,2H)@(2H,4H) matmul (input proj fused)
        xh = jnp.concatenate([h0, h1], axis=1).astype(bf16)   # (B, 2H)
        g1 = jnp.dot(xh, w1, preferred_element_type=f32) + b1  # (B, 4H)
        r1 = jax.nn.sigmoid(g1[:, 0:H])
        z1 = jax.nn.sigmoid(g1[:, H:2 * H])
        n1 = jnp.tanh(g1[:, 2 * H:3 * H] + r1 * g1[:, 3 * H:4 * H])
        h1 = (1.0 - z1) * n1 + z1 * h1

        # ---- FC accumulation (off the serial chain, replaces feat_scr)
        fc_acc = fc_acc + jnp.dot(h1.astype(bf16), fcw[t],
                                  preferred_element_type=f32)

    out_ref[...] = (fc_acc + fcb_ref[...]).astype(out_ref.dtype)


# ---------------------------------------------------------------------------
# Wrapper: one no-grid pallas_call, everything resident in VMEM.
# ---------------------------------------------------------------------------
def gru_reg_forward(x, p):
    """x: (S, B, I) float32; p: prepared (kernel-layout) params."""
    S, B, I = x.shape
    H = p["wh0"].shape[0]
    O = p["fcw"].shape[-1]

    # Pad batch to a full sublane tile so every per-step slice is aligned.
    B_pad = ((B + 7) // 8) * 8
    x_p = jnp.pad(x, ((0, 0), (0, B_pad - B), (0, 0)))
    x_flat = x_p.reshape(S * B_pad, I).astype(jnp.bfloat16)   # row = t*B_pad + b

    kernel = functools.partial(_gru_reg_fused_kernel, S=S, B=B_pad, H=H)
    vmem = pl.BlockSpec(memory_space=pltpu.MemorySpace.VMEM)

    out = pl.pallas_call(
        kernel,
        out_shape=jax.ShapeDtypeStruct((B_pad, O), jnp.float32),
        in_specs=[vmem] * 9,
        out_specs=vmem,
    )(x_flat,
      p["wi0"], p["bi0"], p["wh0"], p["bhn0"],
      p["w1"], p["b1"],
      p["fcw"], p["fcb"])
    return out[:B]


# ---------------------------------------------------------------------------
# Parameters: PyTorch-layout init + one-time repack into the kernel layout.
# ---------------------------------------------------------------------------
def init_params(key, input_size, hidden_size, seq_len, output_size):
    """PyTorch-layout parameters (same shapes / init ranges as nn.GRU + nn.Linear)."""
    H = hidden_size
    ks = jax.random.split(key, 10)
    s = 1.0 / jnp.sqrt(H)
    sf = 1.0 / jnp.sqrt(H * seq_len)
    u = lambda k, shape, sc: jax.random.uniform(k, shape, jnp.float32, -sc, sc)
    return {
        "w_ih_l0": u(ks[0], (3 * H, input_size), s),
        "w_hh_l0": u(ks[1], (3 * H, H), s),
        "b_ih_l0": u(ks[2], (3 * H,), s),
        "b_hh_l0": u(ks[3], (3 * H,), s),
        "w_ih_l1": u(ks[4], (3 * H, H), s),
        "w_hh_l1": u(ks[5], (3 * H, H), s),
        "b_ih_l1": u(ks[6], (3 * H,), s),
        "b_hh_l1": u(ks[7], (3 * H,), s),
        "fc_w": u(ks[8], (output_size, H * seq_len), sf),
        "fc_b": u(ks[9], (output_size,), sf),
    }


def prepare_params(tp, hidden_size, seq_len):
    """One-time repack of PyTorch-layout weights into the fused-kernel layout."""
    H = hidden_size
    bf16 = jnp.bfloat16

    # ----- layer 0: gate-packed (r|z|n on lanes) -----
    wi0 = tp["w_ih_l0"].T                     # (I, 3H)
    wh0 = tp["w_hh_l0"].T                     # (H, 3H)
    bi = tp["b_ih_l0"].reshape(3, H)
    bh = tp["b_hh_l0"].reshape(3, H)
    bi0 = jnp.concatenate([bi[0] + bh[0], bi[1] + bh[1], bi[2]]).reshape(1, 3 * H)
    bhn0 = bh[2].reshape(1, H)

    # ----- layer 1: stacked [x ; h] weights, columns [r | z | n_x | n_h] -----
    wiT = tp["w_ih_l1"].T                     # (H, 3H) : [W_ir^T | W_iz^T | W_in^T]
    whT = tp["w_hh_l1"].T                     # (H, 3H) : [W_hr^T | W_hz^T | W_hn^T]
    zeros = jnp.zeros((H, H), jnp.float32)
    top = jnp.concatenate([wiT, zeros], axis=1)                         # (H, 4H)
    bot = jnp.concatenate([whT[:, :2 * H], zeros, whT[:, 2 * H:]], axis=1)  # (H, 4H)
    w1 = jnp.concatenate([top, bot], axis=0)                            # (2H, 4H)
    bi1 = tp["b_ih_l1"].reshape(3, H)
    bh1 = tp["b_hh_l1"].reshape(3, H)
    b1 = jnp.concatenate([bi1[0] + bh1[0], bi1[1] + bh1[1],
                          bi1[2], bh1[2]]).reshape(1, 4 * H)

    # ----- FC: per-timestep slabs so it can be accumulated in the loop -----
    O = tp["fc_w"].shape[0]
    fcw = tp["fc_w"].T.reshape(seq_len, H, O)  # fcw[t] == fc_w[:, t*H:(t+1)*H].T
    fcb = tp["fc_b"].reshape(1, O)

    return {
        "wi0": wi0.astype(bf16), "bi0": bi0, "wh0": wh0.astype(bf16), "bhn0": bhn0,
        "w1": w1.astype(bf16), "b1": b1,
        "fcw": fcw.astype(bf16), "fcb": fcb,
    }


# ---------------------------------------------------------------------------
# Pure-JAX reference (mirrors the PyTorch module) for the correctness check.
# ---------------------------------------------------------------------------
def gru_reg_reference(x, tp):
    def gru_layer(seq_x, w_ih, w_hh, b_ih, b_hh):
        H = w_hh.shape[1]

        def step(h, xt):
            gi = xt @ w_ih.T + b_ih
            gh = h @ w_hh.T + b_hh
            i_r, i_z, i_n = jnp.split(gi, 3, axis=-1)
            h_r, h_z, h_n = jnp.split(gh, 3, axis=-1)
            r = jax.nn.sigmoid(i_r + h_r)
            z = jax.nn.sigmoid(i_z + h_z)
            n = jnp.tanh(i_n + r * h_n)
            h_new = (1.0 - z) * n + z * h
            return h_new, h_new

        h0 = jnp.zeros((seq_x.shape[1], H), seq_x.dtype)
        _, ys = jax.lax.scan(step, h0, seq_x)
        return ys

    o = gru_layer(x, tp["w_ih_l0"], tp["w_hh_l0"], tp["b_ih_l0"], tp["b_hh_l0"])
    o = gru_layer(o, tp["w_ih_l1"], tp["w_hh_l1"], tp["b_ih_l1"], tp["b_hh_l1"])
    S, B, H = o.shape
    o = jnp.transpose(o, (1, 0, 2)).reshape(B, S * H)
    return o @ tp["fc_w"].T + tp["fc_b"]


if __name__ == "__main__":
    input_size, hidden_size, seq_len, output_size, batch = 4, 32, 10, 1, 2

    key = jax.random.PRNGKey(0)
    kx, kp = jax.random.split(key)
    # x layout matches nn.GRU default (batch_first=False): (seq, batch, input)
    x = jax.random.normal(kx, (seq_len, batch, input_size), jnp.float32)
    torch_layout_params = init_params(kp, input_size, hidden_size, seq_len,
                                      output_size)
    params = prepare_params(torch_layout_params, hidden_size, seq_len)

    out = jax.jit(gru_reg_forward)(x, params)
    jax.block_until_ready(out)
    assert out.shape == (batch, output_size)

    ref = gru_reg_reference(x, torch_layout_params)
    assert jnp.allclose(out, ref, rtol=1e-2, atol=1e-2)
    print("KERNEL_OK")
</pallas_src>

<mosaic_0001>
module attributes {stable_mosaic.version = 11 : i64} {
  func.func @_gru_reg_fused_kernel(%arg0: memref<80x4xbf16, #tpu.memory_space<vmem>>, %arg1: memref<4x96xbf16, #tpu.memory_space<vmem>>, %arg2: memref<1x96xf32, #tpu.memory_space<vmem>>, %arg3: memref<32x96xbf16, #tpu.memory_space<vmem>>, %arg4: memref<1x32xf32, #tpu.memory_space<vmem>>, %arg5: memref<64x128xbf16, #tpu.memory_space<vmem>>, %arg6: memref<1x128xf32, #tpu.memory_space<vmem>>, %arg7: memref<10x32x1xbf16, #tpu.memory_space<vmem>>, %arg8: memref<1x1xf32, #tpu.memory_space<vmem>>, %arg9: memref<8x1xf32, #tpu.memory_space<vmem>>) attributes {dimension_semantics = [], scalar_prefetch = 0 : i64, scratch_operands = 0 : i64, tpu.core_type = #tpu.core_type<tc>} {
    %c0 = arith.constant 0 : index
    %c0_0 = arith.constant 0 : index
    %0 = vector.load %arg0[%c0, %c0_0] : memref<80x4xbf16, #tpu.memory_space<vmem>>, vector<80x4xbf16>
    %c0_1 = arith.constant 0 : index
    %c0_2 = arith.constant 0 : index
    %1 = vector.load %arg1[%c0_1, %c0_2] : memref<4x96xbf16, #tpu.memory_space<vmem>>, vector<4x96xbf16>
    %cst = arith.constant dense<0.000000e+00> : vector<80x96xf32>
    %2 = tpu.matmul %0, %1, %cst {dimension_numbers = #tpu.dot_dimension_numbers<[1], [0], [0], [1], [0, 0, 1, 1], [], []>} : vector<80x4xbf16>, vector<4x96xbf16>, vector<80x96xf32> -> vector<80x96xf32>
    %c0_3 = arith.constant 0 : index
    %c0_4 = arith.constant 0 : index
    %3 = vector.load %arg2[%c0_3, %c0_4] : memref<1x96xf32, #tpu.memory_space<vmem>>, vector<1x96xf32>
    %4 = vector.broadcast %3 : vector<1x96xf32> to vector<80x96xf32>
    %5 = arith.addf %2, %4 : vector<80x96xf32>
    %c0_5 = arith.constant 0 : index
    %c0_6 = arith.constant 0 : index
    %6 = vector.load %arg3[%c0_5, %c0_6] : memref<32x96xbf16, #tpu.memory_space<vmem>>, vector<32x96xbf16>
    %c0_7 = arith.constant 0 : index
    %c0_8 = arith.constant 0 : index
    %7 = vector.load %arg4[%c0_7, %c0_8] : memref<1x32xf32, #tpu.memory_space<vmem>>, vector<1x32xf32>
    %c0_9 = arith.constant 0 : index
    %c0_10 = arith.constant 0 : index
    %8 = vector.load %arg5[%c0_9, %c0_10] : memref<64x128xbf16, #tpu.memory_space<vmem>>, vector<64x128xbf16>
    %c0_11 = arith.constant 0 : index
    %c0_12 = arith.constant 0 : index
    %9 = vector.load %arg6[%c0_11, %c0_12] : memref<1x128xf32, #tpu.memory_space<vmem>>, vector<1x128xf32>
    %c0_13 = arith.constant 0 : index
    %c0_14 = arith.constant 0 : index
    %c0_15 = arith.constant 0 : index
    %10 = vector.load %arg7[%c0_13, %c0_14, %c0_15] : memref<10x32x1xbf16, #tpu.memory_space<vmem>>, vector<10x32x1xbf16>
    %cst_16 = arith.constant 0.000000e+00 : f32
    %11 = vector.broadcast %cst_16 : f32 to vector<8x32xf32>
    %cst_17 = arith.constant 0.000000e+00 : f32
    %12 = vector.broadcast %cst_17 : f32 to vector<8x32xf32>
    %cst_18 = arith.constant 0.000000e+00 : f32
    %13 = vector.broadcast %cst_18 : f32 to vector<8x1xf32>
    %14 = arith.truncf %11 : vector<8x32xf32> to vector<8x32xbf16>
    %cst_19 = arith.constant dense<0.000000e+00> : vector<8x96xf32>
    %15 = tpu.matmul %14, %6, %cst_19 {dimension_numbers = #tpu.dot_dimension_numbers<[1], [0], [0], [1], [0, 0, 1, 1], [], []>} : vector<8x32xbf16>, vector<32x96xbf16>, vector<8x96xf32> -> vector<8x96xf32>
    %16 = vector.extract_strided_slice %5 {offsets = [0, 0], sizes = [8, 96], strides = [1, 1]} : vector<80x96xf32> to vector<8x96xf32>
    %17 = vector.extract_strided_slice %16 {offsets = [0, 0], sizes = [8, 32], strides = [1, 1]} : vector<8x96xf32> to vector<8x32xf32>
    %18 = vector.extract_strided_slice %15 {offsets = [0, 0], sizes = [8, 32], strides = [1, 1]} : vector<8x96xf32> to vector<8x32xf32>
    %19 = arith.addf %17, %18 : vector<8x32xf32>
    %20 = arith.negf %19 : vector<8x32xf32>
    %21 = math.exp %20 : vector<8x32xf32>
    %cst_20 = arith.constant 1.000000e+00 : f32
    %22 = vector.broadcast %cst_20 : f32 to vector<8x32xf32>
    %23 = arith.addf %22, %21 : vector<8x32xf32>
    %24 = arith.divf %22, %23 : vector<8x32xf32>
    %25 = vector.extract_strided_slice %16 {offsets = [0, 32], sizes = [8, 32], strides = [1, 1]} : vector<8x96xf32> to vector<8x32xf32>
    %26 = vector.extract_strided_slice %15 {offsets = [0, 32], sizes = [8, 32], strides = [1, 1]} : vector<8x96xf32> to vector<8x32xf32>
    %27 = arith.addf %25, %26 : vector<8x32xf32>
    %28 = arith.negf %27 : vector<8x32xf32>
    %29 = math.exp %28 : vector<8x32xf32>
    %cst_21 = arith.constant 1.000000e+00 : f32
    %30 = vector.broadcast %cst_21 : f32 to vector<8x32xf32>
    %31 = arith.addf %30, %29 : vector<8x32xf32>
    %32 = arith.divf %30, %31 : vector<8x32xf32>
    %33 = vector.extract_strided_slice %16 {offsets = [0, 64], sizes = [8, 32], strides = [1, 1]} : vector<8x96xf32> to vector<8x32xf32>
    %34 = vector.extract_strided_slice %15 {offsets = [0, 64], sizes = [8, 32], strides = [1, 1]} : vector<8x96xf32> to vector<8x32xf32>
    %35 = vector.broadcast %7 : vector<1x32xf32> to vector<8x32xf32>
    %36 = arith.addf %34, %35 : vector<8x32xf32>
    %37 = arith.mulf %24, %36 : vector<8x32xf32>
    %38 = arith.addf %33, %37 : vector<8x32xf32>
    %39 = math.tanh %38 : vector<8x32xf32>
    %cst_22 = arith.constant 1.000000e+00 : f32
    %40 = vector.broadcast %cst_22 : f32 to vector<8x32xf32>
    %41 = arith.subf %40, %32 : vector<8x32xf32>
    %42 = arith.mulf %41, %39 : vector<8x32xf32>
    %43 = arith.mulf %32, %11 : vector<8x32xf32>
    %44 = arith.addf %42, %43 : vector<8x32xf32>
    %45 = tpu.concatenate %44, %12 in 1 : vector<8x32xf32>, vector<8x32xf32> -> vector<8x64xf32>
    %46 = arith.truncf %45 : vector<8x64xf32> to vector<8x64xbf16>
    %cst_23 = arith.constant dense<0.000000e+00> : vector<8x128xf32>
    %47 = tpu.matmul %46, %8, %cst_23 {dimension_numbers = #tpu.dot_dimension_numbers<[1], [0], [0], [1], [0, 0, 1, 1], [], []>} : vector<8x64xbf16>, vector<64x128xbf16>, vector<8x128xf32> -> vector<8x128xf32>
    %48 = vector.broadcast %9 : vector<1x128xf32> to vector<8x128xf32>
    %49 = arith.addf %47, %48 : vector<8x128xf32>
    %50 = vector.extract_strided_slice %49 {offsets = [0, 0], sizes = [8, 32], strides = [1, 1]} : vector<8x128xf32> to vector<8x32xf32>
    %51 = arith.negf %50 : vector<8x32xf32>
    %52 = math.exp %51 : vector<8x32xf32>
    %cst_24 = arith.constant 1.000000e+00 : f32
    %53 = vector.broadcast %cst_24 : f32 to vector<8x32xf32>
    %54 = arith.addf %53, %52 : vector<8x32xf32>
    %55 = arith.divf %53, %54 : vector<8x32xf32>
    %56 = vector.extract_strided_slice %49 {offsets = [0, 32], sizes = [8, 32], strides = [1, 1]} : vector<8x128xf32> to vector<8x32xf32>
    %57 = arith.negf %56 : vector<8x32xf32>
    %58 = math.exp %57 : vector<8x32xf32>
    %cst_25 = arith.constant 1.000000e+00 : f32
    %59 = vector.broadcast %cst_25 : f32 to vector<8x32xf32>
    %60 = arith.addf %59, %58 : vector<8x32xf32>
    %61 = arith.divf %59, %60 : vector<8x32xf32>
    %62 = vector.extract_strided_slice %49 {offsets = [0, 64], sizes = [8, 32], strides = [1, 1]} : vector<8x128xf32> to vector<8x32xf32>
    %63 = vector.extract_strided_slice %49 {offsets = [0, 96], sizes = [8, 32], strides = [1, 1]} : vector<8x128xf32> to vector<8x32xf32>
    %64 = arith.mulf %55, %63 : vector<8x32xf32>
    %65 = arith.addf %62, %64 : vector<8x32xf32>
    %66 = math.tanh %65 : vector<8x32xf32>
    %cst_26 = arith.constant 1.000000e+00 : f32
    %67 = vector.broadcast %cst_26 : f32 to vector<8x32xf32>
    %68 = arith.subf %67, %61 : vector<8x32xf32>
    %69 = arith.mulf %68, %66 : vector<8x32xf32>
    %70 = arith.mulf %61, %12 : vector<8x32xf32>
    %71 = arith.addf %69, %70 : vector<8x32xf32>
    %72 = arith.truncf %71 : vector<8x32xf32> to vector<8x32xbf16>
    %73 = vector.extract_strided_slice %10 {offsets = [0, 0, 0], sizes = [1, 32, 1], strides = [1, 1, 1]} : vector<10x32x1xbf16> to vector<1x32x1xbf16>
    %74 = vector.shape_cast %73 : vector<1x32x1xbf16> to vector<32x1xbf16>
    %cst_27 = arith.constant dense<0.000000e+00> : vector<8x1xf32>
    %75 = tpu.matmul %72, %74, %cst_27 {dimension_numbers = #tpu.dot_dimension_numbers<[1], [0], [0], [1], [0, 0, 1, 1], [], []>} : vector<8x32xbf16>, vector<32x1xbf16>, vector<8x1xf32> -> vector<8x1xf32>
    %76 = arith.addf %13, %75 : vector<8x1xf32>
    %77 = arith.truncf %44 : vector<8x32xf32> to vector<8x32xbf16>
    %cst_28 = arith.constant dense<0.000000e+00> : vector<8x96xf32>
    %78 = tpu.matmul %77, %6, %cst_28 {dimension_numbers = #tpu.dot_dimension_numbers<[1], [0], [0], [1], [0, 0, 1, 1], [], []>} : vector<8x32xbf16>, vector<32x96xbf16>, vector<8x96xf32> -> vector<8x96xf32>
    %79 = vector.extract_strided_slice %5 {offsets = [8, 0], sizes = [8, 96], strides = [1, 1]} : vector<80x96xf32> to vector<8x96xf32>
    %80 = vector.extract_strided_slice %79 {offsets = [0, 0], sizes = [8, 32], strides = [1, 1]} : vector<8x96xf32> to vector<8x32xf32>
    %81 = vector.extract_strided_slice %78 {offsets = [0, 0], sizes = [8, 32], strides = [1, 1]} : vector<8x96xf32> to vector<8x32xf32>
    %82 = arith.addf %80, %81 : vector<8x32xf32>
    %83 = arith.negf %82 : vector<8x32xf32>
    %84 = math.exp %83 : vector<8x32xf32>
    %cst_29 = arith.constant 1.000000e+00 : f32
    %85 = vector.broadcast %cst_29 : f32 to vector<8x32xf32>
    %86 = arith.addf %85, %84 : vector<8x32xf32>
    %87 = arith.divf %85, %86 : vector<8x32xf32>
    %88 = vector.extract_strided_slice %79 {offsets = [0, 32], sizes = [8, 32], strides = [1, 1]} : vector<8x96xf32> to vector<8x32xf32>
    %89 = vector.extract_strided_slice %78 {offsets = [0, 32], sizes = [8, 32], strides = [1, 1]} : vector<8x96xf32> to vector<8x32xf32>
    %90 = arith.addf %88, %89 : vector<8x32xf32>
    %91 = arith.negf %90 : vector<8x32xf32>
    %92 = math.exp %91 : vector<8x32xf32>
    %cst_30 = arith.constant 1.000000e+00 : f32
    %93 = vector.broadcast %cst_30 : f32 to vector<8x32xf32>
    %94 = arith.addf %93, %92 : vector<8x32xf32>
    %95 = arith.divf %93, %94 : vector<8x32xf32>
    %96 = vector.extract_strided_slice %79 {offsets = [0, 64], sizes = [8, 32], strides = [1, 1]} : vector<8x96xf32> to vector<8x32xf32>
    %97 = vector.extract_strided_slice %78 {offsets = [0, 64], sizes = [8, 32], strides = [1, 1]} : vector<8x96xf32> to vector<8x32xf32>
    %98 = vector.broadcast %7 : vector<1x32xf32> to vector<8x32xf32>
    %99 = arith.addf %97, %98 : vector<8x32xf32>
    %100 = arith.mulf %87, %99 : vector<8x32xf32>
    %101 = arith.addf %96, %100 : vector<8x32xf32>
    %102 = math.tanh %101 : vector<8x32xf32>
    %cst_31 = arith.constant 1.000000e+00 : f32
    %103 = vector.broadcast %cst_31 : f32 to vector<8x32xf32>
    %104 = arith.subf %103, %95 : vector<8x32xf32>
    %105 = arith.mulf %104, %102 : vector<8x32xf32>
    %106 = arith.mulf %95, %44 : vector<8x32xf32>
    %107 = arith.addf %105, %106 : vector<8x32xf32>
    %108 = tpu.concatenate %107, %71 in 1 : vector<8x32xf32>, vector<8x32xf32> -> vector<8x64xf32>
    %109 = arith.truncf %108 : vector<8x64xf32> to vector<8x64xbf16>
    %cst_32 = arith.constant dense<0.000000e+00> : vector<8x128xf32>
    %110 = tpu.matmul %109, %8, %cst_32 {dimension_numbers = #tpu.dot_dimension_numbers<[1], [0], [0], [1], [0, 0, 1, 1], [], []>} : vector<8x64xbf16>, vector<64x128xbf16>, vector<8x128xf32> -> vector<8x128xf32>
    %111 = vector.broadcast %9 : vector<1x128xf32> to vector<8x128xf32>
    %112 = arith.addf %110, %111 : vector<8x128xf32>
    %113 = vector.extract_strided_slice %112 {offsets = [0, 0], sizes = [8, 32], strides = [1, 1]} : vector<8x128xf32> to vector<8x32xf32>
    %114 = arith.negf %113 : vector<8x32xf32>
    %115 = math.exp %114 : vector<8x32xf32>
    %cst_33 = arith.constant 1.000000e+00 : f32
    %116 = vector.broadcast %cst_33 : f32 to vector<8x32xf32>
    %117 = arith.addf %116, %115 : vector<8x32xf32>
    %118 = arith.divf %116, %117 : vector<8x32xf32>
    %119 = vector.extract_strided_slice %112 {offsets = [0, 32], sizes = [8, 32], strides = [1, 1]} : vector<8x128xf32> to vector<8x32xf32>
    %120 = arith.negf %119 : vector<8x32xf32>
    %121 = math.exp %120 : vector<8x32xf32>
    %cst_34 = arith.constant 1.000000e+00 : f32
    %122 = vector.broadcast %cst_34 : f32 to vector<8x32xf32>
    %123 = arith.addf %122, %121 : vector<8x32xf32>
    %124 = arith.divf %122, %123 : vector<8x32xf32>
    %125 = vector.extract_strided_slice %112 {offsets = [0, 64], sizes = [8, 32], strides = [1, 1]} : vector<8x128xf32> to vector<8x32xf32>
    %126 = vector.extract_strided_slice %112 {offsets = [0, 96], sizes = [8, 32], strides = [1, 1]} : vector<8x128xf32> to vector<8x32xf32>
    %127 = arith.mulf %118, %126 : vector<8x32xf32>
    %128 = arith.addf %125, %127 : vector<8x32xf32>
    %129 = math.tanh %128 : vector<8x32xf32>
    %cst_35 = arith.constant 1.000000e+00 : f32
    %130 = vector.broadcast %cst_35 : f32 to vector<8x32xf32>
    %131 = arith.subf %130, %124 : vector<8x32xf32>
    %132 = arith.mulf %131, %129 : vector<8x32xf32>
    %133 = arith.mulf %124, %71 : vector<8x32xf32>
    %134 = arith.addf %132, %133 : vector<8x32xf32>
    %135 = arith.truncf %134 : vector<8x32xf32> to vector<8x32xbf16>
    %136 = vector.extract_strided_slice %10 {offsets = [1, 0, 0], sizes = [1, 32, 1], strides = [1, 1, 1]} : vector<10x32x1xbf16> to vector<1x32x1xbf16>
    %137 = vector.shape_cast %136 : vector<1x32x1xbf16> to vector<32x1xbf16>
    %cst_36 = arith.constant dense<0.000000e+00> : vector<8x1xf32>
    %138 = tpu.matmul %135, %137, %cst_36 {dimension_numbers = #tpu.dot_dimension_numbers<[1], [0], [0], [1], [0, 0, 1, 1], [], []>} : vector<8x32xbf16>, vector<32x1xbf16>, vector<8x1xf32> -> vector<8x1xf32>
    %139 = arith.addf %76, %138 : vector<8x1xf32>
    %140 = arith.truncf %107 : vector<8x32xf32> to vector<8x32xbf16>
    %cst_37 = arith.constant dense<0.000000e+00> : vector<8x96xf32>
    %141 = tpu.matmul %140, %6, %cst_37 {dimension_numbers = #tpu.dot_dimension_numbers<[1], [0], [0], [1], [0, 0, 1, 1], [], []>} : vector<8x32xbf16>, vector<32x96xbf16>, vector<8x96xf32> -> vector<8x96xf32>
    %142 = vector.extract_strided_slice %5 {offsets = [16, 0], sizes = [8, 96], strides = [1, 1]} : vector<80x96xf32> to vector<8x96xf32>
    %143 = vector.extract_strided_slice %142 {offsets = [0, 0], sizes = [8, 32], strides = [1, 1]} : vector<8x96xf32> to vector<8x32xf32>
    %144 = vector.extract_strided_slice %141 {offsets = [0, 0], sizes = [8, 32], strides = [1, 1]} : vector<8x96xf32> to vector<8x32xf32>
    %145 = arith.addf %143, %144 : vector<8x32xf32>
    %146 = arith.negf %145 : vector<8x32xf32>
    %147 = math.exp %146 : vector<8x32xf32>
    %cst_38 = arith.constant 1.000000e+00 : f32
    %148 = vector.broadcast %cst_38 : f32 to vector<8x32xf32>
    %149 = arith.addf %148, %147 : vector<8x32xf32>
    %150 = arith.divf %148, %149 : vector<8x32xf32>
    %151 = vector.extract_strided_slice %142 {offsets = [0, 32], sizes = [8, 32], strides = [1, 1]} : vector<8x96xf32> to vector<8x32xf32>
    %152 = vector.extract_strided_slice %141 {offsets = [0, 32], sizes = [8, 32], strides = [1, 1]} : vector<8x96xf32> to vector<8x32xf32>
    %153 = arith.addf %151, %152 : vector<8x32xf32>
    %154 = arith.negf %153 : vector<8x32xf32>
    %155 = math.exp %154 : vector<8x32xf32>
    %cst_39 = arith.constant 1.000000e+00 : f32
    %156 = vector.broadcast %cst_39 : f32 to vector<8x32xf32>
    %157 = arith.addf %156, %155 : vector<8x32xf32>
    %158 = arith.divf %156, %157 : vector<8x32xf32>
    %159 = vector.extract_strided_slice %142 {offsets = [0, 64], sizes = [8, 32], strides = [1, 1]} : vector<8x96xf32> to vector<8x32xf32>
    %160 = vector.extract_strided_slice %141 {offsets = [0, 64], sizes = [8, 32], strides = [1, 1]} : vector<8x96xf32> to vector<8x32xf32>
    %161 = vector.broadcast %7 : vector<1x32xf32> to vector<8x32xf32>
    %162 = arith.addf %160, %161 : vector<8x32xf32>
    %163 = arith.mulf %150, %162 : vector<8x32xf32>
    %164 = arith.addf %159, %163 : vector<8x32xf32>
    %165 = math.tanh %164 : vector<8x32xf32>
    %cst_40 = arith.constant 1.000000e+00 : f32
    %166 = vector.broadcast %cst_40 : f32 to vector<8x32xf32>
    %167 = arith.subf %166, %158 : vector<8x32xf32>
    %168 = arith.mulf %167, %165 : vector<8x32xf32>
    %169 = arith.mulf %158, %107 : vector<8x32xf32>
    %170 = arith.addf %168, %169 : vector<8x32xf32>
    %171 = tpu.concatenate %170, %134 in 1 : vector<8x32xf32>, vector<8x32xf32> -> vector<8x64xf32>
    %172 = arith.truncf %171 : vector<8x64xf32> to vector<8x64xbf16>
    %cst_41 = arith.constant dense<0.000000e+00> : vector<8x128xf32>
    %173 = tpu.matmul %172, %8, %cst_41 {dimension_numbers = #tpu.dot_dimension_numbers<[1], [0], [0], [1], [0, 0, 1, 1], [], []>} : vector<8x64xbf16>, vector<64x128xbf16>, vector<8x128xf32> -> vector<8x128xf32>
    %174 = vector.broadcast %9 : vector<1x128xf32> to vector<8x128xf32>
    %175 = arith.addf %173, %174 : vector<8x128xf32>
    %176 = vector.extract_strided_slice %175 {offsets = [0, 0], sizes = [8, 32], strides = [1, 1]} : vector<8x128xf32> to vector<8x32xf32>
    %177 = arith.negf %176 : vector<8x32xf32>
    %178 = math.exp %177 : vector<8x32xf32>
    %cst_42 = arith.constant 1.000000e+00 : f32
    %179 = vector.broadcast %cst_42 : f32 to vector<8x32xf32>
    %180 = arith.addf %179, %178 : vector<8x32xf32>
    %181 = arith.divf %179, %180 : vector<8x32xf32>
    %182 = vector.extract_strided_slice %175 {offsets = [0, 32], sizes = [8, 32], strides = [1, 1]} : vector<8x128xf32> to vector<8x32xf32>
    %183 = arith.negf %182 : vector<8x32xf32>
    %184 = math.exp %183 : vector<8x32xf32>
    %cst_43 = arith.constant 1.000000e+00 : f32
    %185 = vector.broadcast %cst_43 : f32 to vector<8x32xf32>
    %186 = arith.addf %185, %184 : vector<8x32xf32>
    %187 = arith.divf %185, %186 : vector<8x32xf32>
    %188 = vector.extract_strided_slice %175 {offsets = [0, 64], sizes = [8, 32], strides = [1, 1]} : vector<8x128xf32> to vector<8x32xf32>
    %189 = vector.extract_strided_slice %175 {offsets = [0, 96], sizes = [8, 32], strides = [1, 1]} : vector<8x128xf32> to vector<8x32xf32>
    %190 = arith.mulf %181, %189 : vector<8x32xf32>
    %191 = arith.addf %188, %190 : vector<8x32xf32>
    %192 = math.tanh %191 : vector<8x32xf32>
    %cst_44 = arith.constant 1.000000e+00 : f32
    %193 = vector.broadcast %cst_44 : f32 to vector<8x32xf32>
    %194 = arith.subf %193, %187 : vector<8x32xf32>
    %195 = arith.mulf %194, %192 : vector<8x32xf32>
    %196 = arith.mulf %187, %134 : vector<8x32xf32>
    %197 = arith.addf %195, %196 : vector<8x32xf32>
    %198 = arith.truncf %197 : vector<8x32xf32> to vector<8x32xbf16>
    %199 = vector.extract_strided_slice %10 {offsets = [2, 0, 0], sizes = [1, 32, 1], strides = [1, 1, 1]} : vector<10x32x1xbf16> to vector<1x32x1xbf16>
    %200 = vector.shape_cast %199 : vector<1x32x1xbf16> to vector<32x1xbf16>
    %cst_45 = arith.constant dense<0.000000e+00> : vector<8x1xf32>
    %201 = tpu.matmul %198, %200, %cst_45 {dimension_numbers = #tpu.dot_dimension_numbers<[1], [0], [0], [1], [0, 0, 1, 1], [], []>} : vector<8x32xbf16>, vector<32x1xbf16>, vector<8x1xf32> -> vector<8x1xf32>
    %202 = arith.addf %139, %201 : vector<8x1xf32>
    %203 = arith.truncf %170 : vector<8x32xf32> to vector<8x32xbf16>
    %cst_46 = arith.constant dense<0.000000e+00> : vector<8x96xf32>
    %204 = tpu.matmul %203, %6, %cst_46 {dimension_numbers = #tpu.dot_dimension_numbers<[1], [0], [0], [1], [0, 0, 1, 1], [], []>} : vector<8x32xbf16>, vector<32x96xbf16>, vector<8x96xf32> -> vector<8x96xf32>
    %205 = vector.extract_strided_slice %5 {offsets = [24, 0], sizes = [8, 96], strides = [1, 1]} : vector<80x96xf32> to vector<8x96xf32>
    %206 = vector.extract_strided_slice %205 {offsets = [0, 0], sizes = [8, 32], strides = [1, 1]} : vector<8x96xf32> to vector<8x32xf32>
    %207 = vector.extract_strided_slice %204 {offsets = [0, 0], sizes = [8, 32], strides = [1, 1]} : vector<8x96xf32> to vector<8x32xf32>
    %208 = arith.addf %206, %207 : vector<8x32xf32>
    %209 = arith.negf %208 : vector<8x32xf32>
    %210 = math.exp %209 : vector<8x32xf32>
    %cst_47 = arith.constant 1.000000e+00 : f32
    %211 = vector.broadcast %cst_47 : f32 to vector<8x32xf32>
    %212 = arith.addf %211, %210 : vector<8x32xf32>
    %213 = arith.divf %211, %212 : vector<8x32xf32>
    %214 = vector.extract_strided_slice %205 {offsets = [0, 32], sizes = [8, 32], strides = [1, 1]} : vector<8x96xf32> to vector<8x32xf32>
    %215 = vector.extract_strided_slice %204 {offsets = [0, 32], sizes = [8, 32], strides = [1, 1]} : vector<8x96xf32> to vector<8x32xf32>
    %216 = arith.addf %214, %215 : vector<8x32xf32>
    %217 = arith.negf %216 : vector<8x32xf32>
    %218 = math.exp %217 : vector<8x32xf32>
    %cst_48 = arith.constant 1.000000e+00 : f32
    %219 = vector.broadcast %cst_48 : f32 to vector<8x32xf32>
    %220 = arith.addf %219, %218 : vector<8x32xf32>
    %221 = arith.divf %219, %220 : vector<8x32xf32>
    %222 = vector.extract_strided_slice %205 {offsets = [0, 64], sizes = [8, 32], strides = [1, 1]} : vector<8x96xf32> to vector<8x32xf32>
    %223 = vector.extract_strided_slice %204 {offsets = [0, 64], sizes = [8, 32], strides = [1, 1]} : vector<8x96xf32> to vector<8x32xf32>
    %224 = vector.broadcast %7 : vector<1x32xf32> to vector<8x32xf32>
    %225 = arith.addf %223, %224 : vector<8x32xf32>
    %226 = arith.mulf %213, %225 : vector<8x32xf32>
    %227 = arith.addf %222, %226 : vector<8x32xf32>
    %228 = math.tanh %227 : vector<8x32xf32>
    %cst_49 = arith.constant 1.000000e+00 : f32
    %229 = vector.broadcast %cst_49 : f32 to vector<8x32xf32>
    %230 = arith.subf %229, %221 : vector<8x32xf32>
    %231 = arith.mulf %230, %228 : vector<8x32xf32>
    %232 = arith.mulf %221, %170 : vector<8x32xf32>
    %233 = arith.addf %231, %232 : vector<8x32xf32>
    %234 = tpu.concatenate %233, %197 in 1 : vector<8x32xf32>, vector<8x32xf32> -> vector<8x64xf32>
    %235 = arith.truncf %234 : vector<8x64xf32> to vector<8x64xbf16>
    %cst_50 = arith.constant dense<0.000000e+00> : vector<8x128xf32>
    %236 = tpu.matmul %235, %8, %cst_50 {dimension_numbers = #tpu.dot_dimension_numbers<[1], [0], [0], [1], [0, 0, 1, 1], [], []>} : vector<8x64xbf16>, vector<64x128xbf16>, vector<8x128xf32> -> vector<8x128xf32>
    %237 = vector.broadcast %9 : vector<1x128xf32> to vector<8x128xf32>
    %238 = arith.addf %236, %237 : vector<8x128xf32>
    %239 = vector.extract_strided_slice %238 {offsets = [0, 0], sizes = [8, 32], strides = [1, 1]} : vector<8x128xf32> to vector<8x32xf32>
    %240 = arith.negf %239 : vector<8x32xf32>
    %241 = math.exp %240 : vector<8x32xf32>
    %cst_51 = arith.constant 1.000000e+00 : f32
    %242 = vector.broadcast %cst_51 : f32 to vector<8x32xf32>
    %243 = arith.addf %242, %241 : vector<8x32xf32>
    %244 = arith.divf %242, %243 : vector<8x32xf32>
    %245 = vector.extract_strided_slice %238 {offsets = [0, 32], sizes = [8, 32], strides = [1, 1]} : vector<8x128xf32> to vector<8x32xf32>
    %246 = arith.negf %245 : vector<8x32xf32>
    %247 = math.exp %246 : vector<8x32xf32>
    %cst_52 = arith.constant 1.000000e+00 : f32
    %248 = vector.broadcast %cst_52 : f32 to vector<8x32xf32>
    %249 = arith.addf %248, %247 : vector<8x32xf32>
    %250 = arith.divf %248, %249 : vector<8x32xf32>
    %251 = vector.extract_strided_slice %238 {offsets = [0, 64], sizes = [8, 32], strides = [1, 1]} : vector<8x128xf32> to vector<8x32xf32>
    %252 = vector.extract_strided_slice %238 {offsets = [0, 96], sizes = [8, 32], strides = [1, 1]} : vector<8x128xf32> to vector<8x32xf32>
    %253 = arith.mulf %244, %252 : vector<8x32xf32>
    %254 = arith.addf %251, %253 : vector<8x32xf32>
    %255 = math.tanh %254 : vector<8x32xf32>
    %cst_53 = arith.constant 1.000000e+00 : f32
    %256 = vector.broadcast %cst_53 : f32 to vector<8x32xf32>
    %257 = arith.subf %256, %250 : vector<8x32xf32>
    %258 = arith.mulf %257, %255 : vector<8x32xf32>
    %259 = arith.mulf %250, %197 : vector<8x32xf32>
    %260 = arith.addf %258, %259 : vector<8x32xf32>
    %261 = arith.truncf %260 : vector<8x32xf32> to vector<8x32xbf16>
    %262 = vector.extract_strided_slice %10 {offsets = [3, 0, 0], sizes = [1, 32, 1], strides = [1, 1, 1]} : vector<10x32x1xbf16> to vector<1x32x1xbf16>
    %263 = vector.shape_cast %262 : vector<1x32x1xbf16> to vector<32x1xbf16>
    %cst_54 = arith.constant dense<0.000000e+00> : vector<8x1xf32>
    %264 = tpu.matmul %261, %263, %cst_54 {dimension_numbers = #tpu.dot_dimension_numbers<[1], [0], [0], [1], [0, 0, 1, 1], [], []>} : vector<8x32xbf16>, vector<32x1xbf16>, vector<8x1xf32> -> vector<8x1xf32>
    %265 = arith.addf %202, %264 : vector<8x1xf32>
    %266 = arith.truncf %233 : vector<8x32xf32> to vector<8x32xbf16>
    %cst_55 = arith.constant dense<0.000000e+00> : vector<8x96xf32>
    %267 = tpu.matmul %266, %6, %cst_55 {dimension_numbers = #tpu.dot_dimension_numbers<[1], [0], [0], [1], [0, 0, 1, 1], [], []>} : vector<8x32xbf16>, vector<32x96xbf16>, vector<8x96xf32> -> vector<8x96xf32>
    %268 = vector.extract_strided_slice %5 {offsets = [32, 0], sizes = [8, 96], strides = [1, 1]} : vector<80x96xf32> to vector<8x96xf32>
    %269 = vector.extract_strided_slice %268 {offsets = [0, 0], sizes = [8, 32], strides = [1, 1]} : vector<8x96xf32> to vector<8x32xf32>
    %270 = vector.extract_strided_slice %267 {offsets = [0, 0], sizes = [8, 32], strides = [1, 1]} : vector<8x96xf32> to vector<8x32xf32>
    %271 = arith.addf %269, %270 : vector<8x32xf32>
    %272 = arith.negf %271 : vector<8x32xf32>
    %273 = math.exp %272 : vector<8x32xf32>
    %cst_56 = arith.constant 1.000000e+00 : f32
    %274 = vector.broadcast %cst_56 : f32 to vector<8x32xf32>
    %275 = arith.addf %274, %273 : vector<8x32xf32>
    %276 = arith.divf %274, %275 : vector<8x32xf32>
    %277 = vector.extract_strided_slice %268 {offsets = [0, 32], sizes = [8, 32], strides = [1, 1]} : vector<8x96xf32> to vector<8x32xf32>
    %278 = vector.extract_strided_slice %267 {offsets = [0, 32], sizes = [8, 32], strides = [1, 1]} : vector<8x96xf32> to vector<8x32xf32>
    %279 = arith.addf %277, %278 : vector<8x32xf32>
    %280 = arith.negf %279 : vector<8x32xf32>
    %281 = math.exp %280 : vector<8x32xf32>
    %cst_57 = arith.constant 1.000000e+00 : f32
    %282 = vector.broadcast %cst_57 : f32 to vector<8x32xf32>
    %283 = arith.addf %282, %281 : vector<8x32xf32>
    %284 = arith.divf %282, %283 : vector<8x32xf32>
    %285 = vector.extract_strided_slice %268 {offsets = [0, 64], sizes = [8, 32], strides = [1, 1]} : vector<8x96xf32> to vector<8x32xf32>
    %286 = vector.extract_strided_slice %267 {offsets = [0, 64], sizes = [8, 32], strides = [1, 1]} : vector<8x96xf32> to vector<8x32xf32>
    %287 = vector.broadcast %7 : vector<1x32xf32> to vector<8x32xf32>
    %288 = arith.addf %286, %287 : vector<8x32xf32>
    %289 = arith.mulf %276, %288 : vector<8x32xf32>
    %290 = arith.addf %285, %289 : vector<8x32xf32>
    %291 = math.tanh %290 : vector<8x32xf32>
    %cst_58 = arith.constant 1.000000e+00 : f32
    %292 = vector.broadcast %cst_58 : f32 to vector<8x32xf32>
    %293 = arith.subf %292, %284 : vector<8x32xf32>
    %294 = arith.mulf %293, %291 : vector<8x32xf32>
    %295 = arith.mulf %284, %233 : vector<8x32xf32>
    %296 = arith.addf %294, %295 : vector<8x32xf32>
    %297 = tpu.concatenate %296, %260 in 1 : vector<8x32xf32>, vector<8x32xf32> -> vector<8x64xf32>
    %298 = arith.truncf %297 : vector<8x64xf32> to vector<8x64xbf16>
    %cst_59 = arith.constant dense<0.000000e+00> : vector<8x128xf32>
    %299 = tpu.matmul %298, %8, %cst_59 {dimension_numbers = #tpu.dot_dimension_numbers<[1], [0], [0], [1], [0, 0, 1, 1], [], []>} : vector<8x64xbf16>, vector<64x128xbf16>, vector<8x128xf32> -> vector<8x128xf32>
    %300 = vector.broadcast %9 : vector<1x128xf32> to vector<8x128xf32>
    %301 = arith.addf %299, %300 : vector<8x128xf32>
    %302 = vector.extract_strided_slice %301 {offsets = [0, 0], sizes = [8, 32], strides = [1, 1]} : vector<8x128xf32> to vector<8x32xf32>
    %303 = arith.negf %302 : vector<8x32xf32>
    %304 = math.exp %303 : vector<8x32xf32>
    %cst_60 = arith.constant 1.000000e+00 : f32
    %305 = vector.broadcast %cst_60 : f32 to vector<8x32xf32>
    %306 = arith.addf %305, %304 : vector<8x32xf32>
    %307 = arith.divf %305, %306 : vector<8x32xf32>
    %308 = vector.extract_strided_slice %301 {offsets = [0, 32], sizes = [8, 32], strides = [1, 1]} : vector<8x128xf32> to vector<8x32xf32>
    %309 = arith.negf %308 : vector<8x32xf32>
    %310 = math.exp %309 : vector<8x32xf32>
    %cst_61 = arith.constant 1.000000e+00 : f32
    %311 = vector.broadcast %cst_61 : f32 to vector<8x32xf32>
    %312 = arith.addf %311, %310 : vector<8x32xf32>
    %313 = arith.divf %311, %312 : vector<8x32xf32>
    %314 = vector.extract_strided_slice %301 {offsets = [0, 64], sizes = [8, 32], strides = [1, 1]} : vector<8x128xf32> to vector<8x32xf32>
    %315 = vector.extract_strided_slice %301 {offsets = [0, 96], sizes = [8, 32], strides = [1, 1]} : vector<8x128xf32> to vector<8x32xf32>
    %316 = arith.mulf %307, %315 : vector<8x32xf32>
    %317 = arith.addf %314, %316 : vector<8x32xf32>
    %318 = math.tanh %317 : vector<8x32xf32>
    %cst_62 = arith.constant 1.000000e+00 : f32
    %319 = vector.broadcast %cst_62 : f32 to vector<8x32xf32>
    %320 = arith.subf %319, %313 : vector<8x32xf32>
    %321 = arith.mulf %320, %318 : vector<8x32xf32>
    %322 = arith.mulf %313, %260 : vector<8x32xf32>
    %323 = arith.addf %321, %322 : vector<8x32xf32>
    %324 = arith.truncf %323 : vector<8x32xf32> to vector<8x32xbf16>
    %325 = vector.extract_strided_slice %10 {offsets = [4, 0, 0], sizes = [1, 32, 1], strides = [1, 1, 1]} : vector<10x32x1xbf16> to vector<1x32x1xbf16>
    %326 = vector.shape_cast %325 : vector<1x32x1xbf16> to vector<32x1xbf16>
    %cst_63 = arith.constant dense<0.000000e+00> : vector<8x1xf32>
    %327 = tpu.matmul %324, %326, %cst_63 {dimension_numbers = #tpu.dot_dimension_numbers<[1], [0], [0], [1], [0, 0, 1, 1], [], []>} : vector<8x32xbf16>, vector<32x1xbf16>, vector<8x1xf32> -> vector<8x1xf32>
    %328 = arith.addf %265, %327 : vector<8x1xf32>
    %329 = arith.truncf %296 : vector<8x32xf32> to vector<8x32xbf16>
    %cst_64 = arith.constant dense<0.000000e+00> : vector<8x96xf32>
    %330 = tpu.matmul %329, %6, %cst_64 {dimension_numbers = #tpu.dot_dimension_numbers<[1], [0], [0], [1], [0, 0, 1, 1], [], []>} : vector<8x32xbf16>, vector<32x96xbf16>, vector<8x96xf32> -> vector<8x96xf32>
    %331 = vector.extract_strided_slice %5 {offsets = [40, 0], sizes = [8, 96], strides = [1, 1]} : vector<80x96xf32> to vector<8x96xf32>
    %332 = vector.extract_strided_slice %331 {offsets = [0, 0], sizes = [8, 32], strides = [1, 1]} : vector<8x96xf32> to vector<8x32xf32>
    %333 = vector.extract_strided_slice %330 {offsets = [0, 0], sizes = [8, 32], strides = [1, 1]} : vector<8x96xf32> to vector<8x32xf32>
    %334 = arith.addf %332, %333 : vector<8x32xf32>
    %335 = arith.negf %334 : vector<8x32xf32>
    %336 = math.exp %335 : vector<8x32xf32>
    %cst_65 = arith.constant 1.000000e+00 : f32
    %337 = vector.broadcast %cst_65 : f32 to vector<8x32xf32>
    %338 = arith.addf %337, %336 : vector<8x32xf32>
    %339 = arith.divf %337, %338 : vector<8x32xf32>
    %340 = vector.extract_strided_slice %331 {offsets = [0, 32], sizes = [8, 32], strides = [1, 1]} : vector<8x96xf32> to vector<8x32xf32>
    %341 = vector.extract_strided_slice %330 {offsets = [0, 32], sizes = [8, 32], strides = [1, 1]} : vector<8x96xf32> to vector<8x32xf32>
    %342 = arith.addf %340, %341 : vector<8x32xf32>
    %343 = arith.negf %342 : vector<8x32xf32>
    %344 = math.exp %343 : vector<8x32xf32>
    %cst_66 = arith.constant 1.000000e+00 : f32
    %345 = vector.broadcast %cst_66 : f32 to vector<8x32xf32>
    %346 = arith.addf %345, %344 : vector<8x32xf32>
    %347 = arith.divf %345, %346 : vector<8x32xf32>
    %348 = vector.extract_strided_slice %331 {offsets = [0, 64], sizes = [8, 32], strides = [1, 1]} : vector<8x96xf32> to vector<8x32xf32>
    %349 = vector.extract_strided_slice %330 {offsets = [0, 64], sizes = [8, 32], strides = [1, 1]} : vector<8x96xf32> to vector<8x32xf32>
    %350 = vector.broadcast %7 : vector<1x32xf32> to vector<8x32xf32>
    %351 = arith.addf %349, %350 : vector<8x32xf32>
    %352 = arith.mulf %339, %351 : vector<8x32xf32>
    %353 = arith.addf %348, %352 : vector<8x32xf32>
    %354 = math.tanh %353 : vector<8x32xf32>
    %cst_67 = arith.constant 1.000000e+00 : f32
    %355 = vector.broadcast %cst_67 : f32 to vector<8x32xf32>
    %356 = arith.subf %355, %347 : vector<8x32xf32>
    %357 = arith.mulf %356, %354 : vector<8x32xf32>
    %358 = arith.mulf %347, %296 : vector<8x32xf32>
    %359 = arith.addf %357, %358 : vector<8x32xf32>
    %360 = tpu.concatenate %359, %323 in 1 : vector<8x32xf32>, vector<8x32xf32> -> vector<8x64xf32>
    %361 = arith.truncf %360 : vector<8x64xf32> to vector<8x64xbf16>
    %cst_68 = arith.constant dense<0.000000e+00> : vector<8x128xf32>
    %362 = tpu.matmul %361, %8, %cst_68 {dimension_numbers = #tpu.dot_dimension_numbers<[1], [0], [0], [1], [0, 0, 1, 1], [], []>} : vector<8x64xbf16>, vector<64x128xbf16>, vector<8x128xf32> -> vector<8x128xf32>
    %363 = vector.broadcast %9 : vector<1x128xf32> to vector<8x128xf32>
    %364 = arith.addf %362, %363 : vector<8x128xf32>
    %365 = vector.extract_strided_slice %364 {offsets = [0, 0], sizes = [8, 32], strides = [1, 1]} : vector<8x128xf32> to vector<8x32xf32>
    %366 = arith.negf %365 : vector<8x32xf32>
    %367 = math.exp %366 : vector<8x32xf32>
    %cst_69 = arith.constant 1.000000e+00 : f32
    %368 = vector.broadcast %cst_69 : f32 to vector<8x32xf32>
    %369 = arith.addf %368, %367 : vector<8x32xf32>
    %370 = arith.divf %368, %369 : vector<8x32xf32>
    %371 = vector.extract_strided_slice %364 {offsets = [0, 32], sizes = [8, 32], strides = [1, 1]} : vector<8x128xf32> to vector<8x32xf32>
    %372 = arith.negf %371 : vector<8x32xf32>
    %373 = math.exp %372 : vector<8x32xf32>
    %cst_70 = arith.constant 1.000000e+00 : f32
    %374 = vector.broadcast %cst_70 : f32 to vector<8x32xf32>
    %375 = arith.addf %374, %373 : vector<8x32xf32>
    %376 = arith.divf %374, %375 : vector<8x32xf32>
    %377 = vector.extract_strided_slice %364 {offsets = [0, 64], sizes = [8, 32], strides = [1, 1]} : vector<8x128xf32> to vector<8x32xf32>
    %378 = vector.extract_strided_slice %364 {offsets = [0, 96], sizes = [8, 32], strides = [1, 1]} : vector<8x128xf32> to vector<8x32xf32>
    %379 = arith.mulf %370, %378 : vector<8x32xf32>
    %380 = arith.addf %377, %379 : vector<8x32xf32>
    %381 = math.tanh %380 : vector<8x32xf32>
    %cst_71 = arith.constant 1.000000e+00 : f32
    %382 = vector.broadcast %cst_71 : f32 to vector<8x32xf32>
    %383 = arith.subf %382, %376 : vector<8x32xf32>
    %384 = arith.mulf %383, %381 : vector<8x32xf32>
    %385 = arith.mulf %376, %323 : vector<8x32xf32>
    %386 = arith.addf %384, %385 : vector<8x32xf32>
    %387 = arith.truncf %386 : vector<8x32xf32> to vector<8x32xbf16>
    %388 = vector.extract_strided_slice %10 {offsets = [5, 0, 0], sizes = [1, 32, 1], strides = [1, 1, 1]} : vector<10x32x1xbf16> to vector<1x32x1xbf16>
    %389 = vector.shape_cast %388 : vector<1x32x1xbf16> to vector<32x1xbf16>
    %cst_72 = arith.constant dense<0.000000e+00> : vector<8x1xf32>
    %390 = tpu.matmul %387, %389, %cst_72 {dimension_numbers = #tpu.dot_dimension_numbers<[1], [0], [0], [1], [0, 0, 1, 1], [], []>} : vector<8x32xbf16>, vector<32x1xbf16>, vector<8x1xf32> -> vector<8x1xf32>
    %391 = arith.addf %328, %390 : vector<8x1xf32>
    %392 = arith.truncf %359 : vector<8x32xf32> to vector<8x32xbf16>
    %cst_73 = arith.constant dense<0.000000e+00> : vector<8x96xf32>
    %393 = tpu.matmul %392, %6, %cst_73 {dimension_numbers = #tpu.dot_dimension_numbers<[1], [0], [0], [1], [0, 0, 1, 1], [], []>} : vector<8x32xbf16>, vector<32x96xbf16>, vector<8x96xf32> -> vector<8x96xf32>
    %394 = vector.extract_strided_slice %5 {offsets = [48, 0], sizes = [8, 96], strides = [1, 1]} : vector<80x96xf32> to vector<8x96xf32>
    %395 = vector.extract_strided_slice %394 {offsets = [0, 0], sizes = [8, 32], strides = [1, 1]} : vector<8x96xf32> to vector<8x32xf32>
    %396 = vector.extract_strided_slice %393 {offsets = [0, 0], sizes = [8, 32], strides = [1, 1]} : vector<8x96xf32> to vector<8x32xf32>
    %397 = arith.addf %395, %396 : vector<8x32xf32>
    %398 = arith.negf %397 : vector<8x32xf32>
    %399 = math.exp %398 : vector<8x32xf32>
    %cst_74 = arith.constant 1.000000e+00 : f32
    %400 = vector.broadcast %cst_74 : f32 to vector<8x32xf32>
    %401 = arith.addf %400, %399 : vector<8x32xf32>
    %402 = arith.divf %400, %401 : vector<8x32xf32>
    %403 = vector.extract_strided_slice %394 {offsets = [0, 32], sizes = [8, 32], strides = [1, 1]} : vector<8x96xf32> to vector<8x32xf32>
    %404 = vector.extract_strided_slice %393 {offsets = [0, 32], sizes = [8, 32], strides = [1, 1]} : vector<8x96xf32> to vector<8x32xf32>
    %405 = arith.addf %403, %404 : vector<8x32xf32>
    %406 = arith.negf %405 : vector<8x32xf32>
    %407 = math.exp %406 : vector<8x32xf32>
    %cst_75 = arith.constant 1.000000e+00 : f32
    %408 = vector.broadcast %cst_75 : f32 to vector<8x32xf32>
    %409 = arith.addf %408, %407 : vector<8x32xf32>
    %410 = arith.divf %408, %409 : vector<8x32xf32>
    %411 = vector.extract_strided_slice %394 {offsets = [0, 64], sizes = [8, 32], strides = [1, 1]} : vector<8x96xf32> to vector<8x32xf32>
    %412 = vector.extract_strided_slice %393 {offsets = [0, 64], sizes = [8, 32], strides = [1, 1]} : vector<8x96xf32> to vector<8x32xf32>
    %413 = vector.broadcast %7 : vector<1x32xf32> to vector<8x32xf32>
    %414 = arith.addf %412, %413 : vector<8x32xf32>
    %415 = arith.mulf %402, %414 : vector<8x32xf32>
    %416 = arith.addf %411, %415 : vector<8x32xf32>
    %417 = math.tanh %416 : vector<8x32xf32>
    %cst_76 = arith.constant 1.000000e+00 : f32
    %418 = vector.broadcast %cst_76 : f32 to vector<8x32xf32>
    %419 = arith.subf %418, %410 : vector<8x32xf32>
    %420 = arith.mulf %419, %417 : vector<8x32xf32>
    %421 = arith.mulf %410, %359 : vector<8x32xf32>
    %422 = arith.addf %420, %421 : vector<8x32xf32>
    %423 = tpu.concatenate %422, %386 in 1 : vector<8x32xf32>, vector<8x32xf32> -> vector<8x64xf32>
    %424 = arith.truncf %423 : vector<8x64xf32> to vector<8x64xbf16>
    %cst_77 = arith.constant dense<0.000000e+00> : vector<8x128xf32>
    %425 = tpu.matmul %424, %8, %cst_77 {dimension_numbers = #tpu.dot_dimension_numbers<[1], [0], [0], [1], [0, 0, 1, 1], [], []>} : vector<8x64xbf16>, vector<64x128xbf16>, vector<8x128xf32> -> vector<8x128xf32>
    %426 = vector.broadcast %9 : vector<1x128xf32> to vector<8x128xf32>
    %427 = arith.addf %425, %426 : vector<8x128xf32>
    %428 = vector.extract_strided_slice %427 {offsets = [0, 0], sizes = [8, 32], strides = [1, 1]} : vector<8x128xf32> to vector<8x32xf32>
    %429 = arith.negf %428 : vector<8x32xf32>
    %430 = math.exp %429 : vector<8x32xf32>
    %cst_78 = arith.constant 1.000000e+00 : f32
    %431 = vector.broadcast %cst_78 : f32 to vector<8x32xf32>
    %432 = arith.addf %431, %430 : vector<8x32xf32>
    %433 = arith.divf %431, %432 : vector<8x32xf32>
    %434 = vector.extract_strided_slice %427 {offsets = [0, 32], sizes = [8, 32], strides = [1, 1]} : vector<8x128xf32> to vector<8x32xf32>
    %435 = arith.negf %434 : vector<8x32xf32>
    %436 = math.exp %435 : vector<8x32xf32>
    %cst_79 = arith.constant 1.000000e+00 : f32
    %437 = vector.broadcast %cst_79 : f32 to vector<8x32xf32>
    %438 = arith.addf %437, %436 : vector<8x32xf32>
    %439 = arith.divf %437, %438 : vector<8x32xf32>
    %440 = vector.extract_strided_slice %427 {offsets = [0, 64], sizes = [8, 32], strides = [1, 1]} : vector<8x128xf32> to vector<8x32xf32>
    %441 = vector.extract_strided_slice %427 {offsets = [0, 96], sizes = [8, 32], strides = [1, 1]} : vector<8x128xf32> to vector<8x32xf32>
    %442 = arith.mulf %433, %441 : vector<8x32xf32>
    %443 = arith.addf %440, %442 : vector<8x32xf32>
    %444 = math.tanh %443 : vector<8x32xf32>
    %cst_80 = arith.constant 1.000000e+00 : f32
    %445 = vector.broadcast %cst_80 : f32 to vector<8x32xf32>
    %446 = arith.subf %445, %439 : vector<8x32xf32>
    %447 = arith.mulf %446, %444 : vector<8x32xf32>
    %448 = arith.mulf %439, %386 : vector<8x32xf32>
    %449 = arith.addf %447, %448 : vector<8x32xf32>
    %450 = arith.truncf %449 : vector<8x32xf32> to vector<8x32xbf16>
    %451 = vector.extract_strided_slice %10 {offsets = [6, 0, 0], sizes = [1, 32, 1], strides = [1, 1, 1]} : vector<10x32x1xbf16> to vector<1x32x1xbf16>
    %452 = vector.shape_cast %451 : vector<1x32x1xbf16> to vector<32x1xbf16>
    %cst_81 = arith.constant dense<0.000000e+00> : vector<8x1xf32>
    %453 = tpu.matmul %450, %452, %cst_81 {dimension_numbers = #tpu.dot_dimension_numbers<[1], [0], [0], [1], [0, 0, 1, 1], [], []>} : vector<8x32xbf16>, vector<32x1xbf16>, vector<8x1xf32> -> vector<8x1xf32>
    %454 = arith.addf %391, %453 : vector<8x1xf32>
    %455 = arith.truncf %422 : vector<8x32xf32> to vector<8x32xbf16>
    %cst_82 = arith.constant dense<0.000000e+00> : vector<8x96xf32>
    %456 = tpu.matmul %455, %6, %cst_82 {dimension_numbers = #tpu.dot_dimension_numbers<[1], [0], [0], [1], [0, 0, 1, 1], [], []>} : vector<8x32xbf16>, vector<32x96xbf16>, vector<8x96xf32> -> vector<8x96xf32>
    %457 = vector.extract_strided_slice %5 {offsets = [56, 0], sizes = [8, 96], strides = [1, 1]} : vector<80x96xf32> to vector<8x96xf32>
    %458 = vector.extract_strided_slice %457 {offsets = [0, 0], sizes = [8, 32], strides = [1, 1]} : vector<8x96xf32> to vector<8x32xf32>
    %459 = vector.extract_strided_slice %456 {offsets = [0, 0], sizes = [8, 32], strides = [1, 1]} : vector<8x96xf32> to vector<8x32xf32>
    %460 = arith.addf %458, %459 : vector<8x32xf32>
    %461 = arith.negf %460 : vector<8x32xf32>
    %462 = math.exp %461 : vector<8x32xf32>
    %cst_83 = arith.constant 1.000000e+00 : f32
    %463 = vector.broadcast %cst_83 : f32 to vector<8x32xf32>
    %464 = arith.addf %463, %462 : vector<8x32xf32>
    %465 = arith.divf %463, %464 : vector<8x32xf32>
    %466 = vector.extract_strided_slice %457 {offsets = [0, 32], sizes = [8, 32], strides = [1, 1]} : vector<8x96xf32> to vector<8x32xf32>
    %467 = vector.extract_strided_slice %456 {offsets = [0, 32], sizes = [8, 32], strides = [1, 1]} : vector<8x96xf32> to vector<8x32xf32>
    %468 = arith.addf %466, %467 : vector<8x32xf32>
    %469 = arith.negf %468 : vector<8x32xf32>
    %470 = math.exp %469 : vector<8x32xf32>
    %cst_84 = arith.constant 1.000000e+00 : f32
    %471 = vector.broadcast %cst_84 : f32 to vector<8x32xf32>
    %472 = arith.addf %471, %470 : vector<8x32xf32>
    %473 = arith.divf %471, %472 : vector<8x32xf32>
    %474 = vector.extract_strided_slice %457 {offsets = [0, 64], sizes = [8, 32], strides = [1, 1]} : vector<8x96xf32> to vector<8x32xf32>
    %475 = vector.extract_strided_slice %456 {offsets = [0, 64], sizes = [8, 32], strides = [1, 1]} : vector<8x96xf32> to vector<8x32xf32>
    %476 = vector.broadcast %7 : vector<1x32xf32> to vector<8x32xf32>
    %477 = arith.addf %475, %476 : vector<8x32xf32>
    %478 = arith.mulf %465, %477 : vector<8x32xf32>
    %479 = arith.addf %474, %478 : vector<8x32xf32>
    %480 = math.tanh %479 : vector<8x32xf32>
    %cst_85 = arith.constant 1.000000e+00 : f32
    %481 = vector.broadcast %cst_85 : f32 to vector<8x32xf32>
    %482 = arith.subf %481, %473 : vector<8x32xf32>
    %483 = arith.mulf %482, %480 : vector<8x32xf32>
    %484 = arith.mulf %473, %422 : vector<8x32xf32>
    %485 = arith.addf %483, %484 : vector<8x32xf32>
    %486 = tpu.concatenate %485, %449 in 1 : vector<8x32xf32>, vector<8x32xf32> -> vector<8x64xf32>
    %487 = arith.truncf %486 : vector<8x64xf32> to vector<8x64xbf16>
    %cst_86 = arith.constant dense<0.000000e+00> : vector<8x128xf32>
    %488 = tpu.matmul %487, %8, %cst_86 {dimension_numbers = #tpu.dot_dimension_numbers<[1], [0], [0], [1], [0, 0, 1, 1], [], []>} : vector<8x64xbf16>, vector<64x128xbf16>, vector<8x128xf32> -> vector<8x128xf32>
    %489 = vector.broadcast %9 : vector<1x128xf32> to vector<8x128xf32>
    %490 = arith.addf %488, %489 : vector<8x128xf32>
    %491 = vector.extract_strided_slice %490 {offsets = [0, 0], sizes = [8, 32], strides = [1, 1]} : vector<8x128xf32> to vector<8x32xf32>
    %492 = arith.negf %491 : vector<8x32xf32>
    %493 = math.exp %492 : vector<8x32xf32>
    %cst_87 = arith.constant 1.000000e+00 : f32
    %494 = vector.broadcast %cst_87 : f32 to vector<8x32xf32>
    %495 = arith.addf %494, %493 : vector<8x32xf32>
    %496 = arith.divf %494, %495 : vector<8x32xf32>
    %497 = vector.extract_strided_slice %490 {offsets = [0, 32], sizes = [8, 32], strides = [1, 1]} : vector<8x128xf32> to vector<8x32xf32>
    %498 = arith.negf %497 : vector<8x32xf32>
    %499 = math.exp %498 : vector<8x32xf32>
    %cst_88 = arith.constant 1.000000e+00 : f32
    %500 = vector.broadcast %cst_88 : f32 to vector<8x32xf32>
    %501 = arith.addf %500, %499 : vector<8x32xf32>
    %502 = arith.divf %500, %501 : vector<8x32xf32>
    %503 = vector.extract_strided_slice %490 {offsets = [0, 64], sizes = [8, 32], strides = [1, 1]} : vector<8x128xf32> to vector<8x32xf32>
    %504 = vector.extract_strided_slice %490 {offsets = [0, 96], sizes = [8, 32], strides = [1, 1]} : vector<8x128xf32> to vector<8x32xf32>
    %505 = arith.mulf %496, %504 : vector<8x32xf32>
    %506 = arith.addf %503, %505 : vector<8x32xf32>
    %507 = math.tanh %506 : vector<8x32xf32>
    %cst_89 = arith.constant 1.000000e+00 : f32
    %508 = vector.broadcast %cst_89 : f32 to vector<8x32xf32>
    %509 = arith.subf %508, %502 : vector<8x32xf32>
    %510 = arith.mulf %509, %507 : vector<8x32xf32>
    %511 = arith.mulf %502, %449 : vector<8x32xf32>
    %512 = arith.addf %510, %511 : vector<8x32xf32>
    %513 = arith.truncf %512 : vector<8x32xf32> to vector<8x32xbf16>
    %514 = vector.extract_strided_slice %10 {offsets = [7, 0, 0], sizes = [1, 32, 1], strides = [1, 1, 1]} : vector<10x32x1xbf16> to vector<1x32x1xbf16>
    %515 = vector.shape_cast %514 : vector<1x32x1xbf16> to vector<32x1xbf16>
    %cst_90 = arith.constant dense<0.000000e+00> : vector<8x1xf32>
    %516 = tpu.matmul %513, %515, %cst_90 {dimension_numbers = #tpu.dot_dimension_numbers<[1], [0], [0], [1], [0, 0, 1, 1], [], []>} : vector<8x32xbf16>, vector<32x1xbf16>, vector<8x1xf32> -> vector<8x1xf32>
    %517 = arith.addf %454, %516 : vector<8x1xf32>
    %518 = arith.truncf %485 : vector<8x32xf32> to vector<8x32xbf16>
    %cst_91 = arith.constant dense<0.000000e+00> : vector<8x96xf32>
    %519 = tpu.matmul %518, %6, %cst_91 {dimension_numbers = #tpu.dot_dimension_numbers<[1], [0], [0], [1], [0, 0, 1, 1], [], []>} : vector<8x32xbf16>, vector<32x96xbf16>, vector<8x96xf32> -> vector<8x96xf32>
    %520 = vector.extract_strided_slice %5 {offsets = [64, 0], sizes = [8, 96], strides = [1, 1]} : vector<80x96xf32> to vector<8x96xf32>
    %521 = vector.extract_strided_slice %520 {offsets = [0, 0], sizes = [8, 32], strides = [1, 1]} : vector<8x96xf32> to vector<8x32xf32>
    %522 = vector.extract_strided_slice %519 {offsets = [0, 0], sizes = [8, 32], strides = [1, 1]} : vector<8x96xf32> to vector<8x32xf32>
    %523 = arith.addf %521, %522 : vector<8x32xf32>
    %524 = arith.negf %523 : vector<8x32xf32>
    %525 = math.exp %524 : vector<8x32xf32>
    %cst_92 = arith.constant 1.000000e+00 : f32
    %526 = vector.broadcast %cst_92 : f32 to vector<8x32xf32>
    %527 = arith.addf %526, %525 : vector<8x32xf32>
    %528 = arith.divf %526, %527 : vector<8x32xf32>
    %529 = vector.extract_strided_slice %520 {offsets = [0, 32], sizes = [8, 32], strides = [1, 1]} : vector<8x96xf32> to vector<8x32xf32>
    %530 = vector.extract_strided_slice %519 {offsets = [0, 32], sizes = [8, 32], strides = [1, 1]} : vector<8x96xf32> to vector<8x32xf32>
    %531 = arith.addf %529, %530 : vector<8x32xf32>
    %532 = arith.negf %531 : vector<8x32xf32>
    %533 = math.exp %532 : vector<8x32xf32>
    %cst_93 = arith.constant 1.000000e+00 : f32
    %534 = vector.broadcast %cst_93 : f32 to vector<8x32xf32>
    %535 = arith.addf %534, %533 : vector<8x32xf32>
    %536 = arith.divf %534, %535 : vector<8x32xf32>
    %537 = vector.extract_strided_slice %520 {offsets = [0, 64], sizes = [8, 32], strides = [1, 1]} : vector<8x96xf32> to vector<8x32xf32>
    %538 = vector.extract_strided_slice %519 {offsets = [0, 64], sizes = [8, 32], strides = [1, 1]} : vector<8x96xf32> to vector<8x32xf32>
    %539 = vector.broadcast %7 : vector<1x32xf32> to vector<8x32xf32>
    %540 = arith.addf %538, %539 : vector<8x32xf32>
    %541 = arith.mulf %528, %540 : vector<8x32xf32>
    %542 = arith.addf %537, %541 : vector<8x32xf32>
    %543 = math.tanh %542 : vector<8x32xf32>
    %cst_94 = arith.constant 1.000000e+00 : f32
    %544 = vector.broadcast %cst_94 : f32 to vector<8x32xf32>
    %545 = arith.subf %544, %536 : vector<8x32xf32>
    %546 = arith.mulf %545, %543 : vector<8x32xf32>
    %547 = arith.mulf %536, %485 : vector<8x32xf32>
    %548 = arith.addf %546, %547 : vector<8x32xf32>
    %549 = tpu.concatenate %548, %512 in 1 : vector<8x32xf32>, vector<8x32xf32> -> vector<8x64xf32>
    %550 = arith.truncf %549 : vector<8x64xf32> to vector<8x64xbf16>
    %cst_95 = arith.constant dense<0.000000e+00> : vector<8x128xf32>
    %551 = tpu.matmul %550, %8, %cst_95 {dimension_numbers = #tpu.dot_dimension_numbers<[1], [0], [0], [1], [0, 0, 1, 1], [], []>} : vector<8x64xbf16>, vector<64x128xbf16>, vector<8x128xf32> -> vector<8x128xf32>
    %552 = vector.broadcast %9 : vector<1x128xf32> to vector<8x128xf32>
    %553 = arith.addf %551, %552 : vector<8x128xf32>
    %554 = vector.extract_strided_slice %553 {offsets = [0, 0], sizes = [8, 32], strides = [1, 1]} : vector<8x128xf32> to vector<8x32xf32>
    %555 = arith.negf %554 : vector<8x32xf32>
    %556 = math.exp %555 : vector<8x32xf32>
    %cst_96 = arith.constant 1.000000e+00 : f32
    %557 = vector.broadcast %cst_96 : f32 to vector<8x32xf32>
    %558 = arith.addf %557, %556 : vector<8x32xf32>
    %559 = arith.divf %557, %558 : vector<8x32xf32>
    %560 = vector.extract_strided_slice %553 {offsets = [0, 32], sizes = [8, 32], strides = [1, 1]} : vector<8x128xf32> to vector<8x32xf32>
    %561 = arith.negf %560 : vector<8x32xf32>
    %562 = math.exp %561 : vector<8x32xf32>
    %cst_97 = arith.constant 1.000000e+00 : f32
    %563 = vector.broadcast %cst_97 : f32 to vector<8x32xf32>
    %564 = arith.addf %563, %562 : vector<8x32xf32>
    %565 = arith.divf %563, %564 : vector<8x32xf32>
    %566 = vector.extract_strided_slice %553 {offsets = [0, 64], sizes = [8, 32], strides = [1, 1]} : vector<8x128xf32> to vector<8x32xf32>
    %567 = vector.extract_strided_slice %553 {offsets = [0, 96], sizes = [8, 32], strides = [1, 1]} : vector<8x128xf32> to vector<8x32xf32>
    %568 = arith.mulf %559, %567 : vector<8x32xf32>
    %569 = arith.addf %566, %568 : vector<8x32xf32>
    %570 = math.tanh %569 : vector<8x32xf32>
    %cst_98 = arith.constant 1.000000e+00 : f32
    %571 = vector.broadcast %cst_98 : f32 to vector<8x32xf32>
    %572 = arith.subf %571, %565 : vector<8x32xf32>
    %573 = arith.mulf %572, %570 : vector<8x32xf32>
    %574 = arith.mulf %565, %512 : vector<8x32xf32>
    %575 = arith.addf %573, %574 : vector<8x32xf32>
    %576 = arith.truncf %575 : vector<8x32xf32> to vector<8x32xbf16>
    %577 = vector.extract_strided_slice %10 {offsets = [8, 0, 0], sizes = [1, 32, 1], strides = [1, 1, 1]} : vector<10x32x1xbf16> to vector<1x32x1xbf16>
    %578 = vector.shape_cast %577 : vector<1x32x1xbf16> to vector<32x1xbf16>
    %cst_99 = arith.constant dense<0.000000e+00> : vector<8x1xf32>
    %579 = tpu.matmul %576, %578, %cst_99 {dimension_numbers = #tpu.dot_dimension_numbers<[1], [0], [0], [1], [0, 0, 1, 1], [], []>} : vector<8x32xbf16>, vector<32x1xbf16>, vector<8x1xf32> -> vector<8x1xf32>
    %580 = arith.addf %517, %579 : vector<8x1xf32>
    %581 = arith.truncf %548 : vector<8x32xf32> to vector<8x32xbf16>
    %cst_100 = arith.constant dense<0.000000e+00> : vector<8x96xf32>
    %582 = tpu.matmul %581, %6, %cst_100 {dimension_numbers = #tpu.dot_dimension_numbers<[1], [0], [0], [1], [0, 0, 1, 1], [], []>} : vector<8x32xbf16>, vector<32x96xbf16>, vector<8x96xf32> -> vector<8x96xf32>
    %583 = vector.extract_strided_slice %5 {offsets = [72, 0], sizes = [8, 96], strides = [1, 1]} : vector<80x96xf32> to vector<8x96xf32>
    %584 = vector.extract_strided_slice %583 {offsets = [0, 0], sizes = [8, 32], strides = [1, 1]} : vector<8x96xf32> to vector<8x32xf32>
    %585 = vector.extract_strided_slice %582 {offsets = [0, 0], sizes = [8, 32], strides = [1, 1]} : vector<8x96xf32> to vector<8x32xf32>
    %586 = arith.addf %584, %585 : vector<8x32xf32>
    %587 = arith.negf %586 : vector<8x32xf32>
    %588 = math.exp %587 : vector<8x32xf32>
    %cst_101 = arith.constant 1.000000e+00 : f32
    %589 = vector.broadcast %cst_101 : f32 to vector<8x32xf32>
    %590 = arith.addf %589, %588 : vector<8x32xf32>
    %591 = arith.divf %589, %590 : vector<8x32xf32>
    %592 = vector.extract_strided_slice %583 {offsets = [0, 32], sizes = [8, 32], strides = [1, 1]} : vector<8x96xf32> to vector<8x32xf32>
    %593 = vector.extract_strided_slice %582 {offsets = [0, 32], sizes = [8, 32], strides = [1, 1]} : vector<8x96xf32> to vector<8x32xf32>
    %594 = arith.addf %592, %593 : vector<8x32xf32>
    %595 = arith.negf %594 : vector<8x32xf32>
    %596 = math.exp %595 : vector<8x32xf32>
    %cst_102 = arith.constant 1.000000e+00 : f32
    %597 = vector.broadcast %cst_102 : f32 to vector<8x32xf32>
    %598 = arith.addf %597, %596 : vector<8x32xf32>
    %599 = arith.divf %597, %598 : vector<8x32xf32>
    %600 = vector.extract_strided_slice %583 {offsets = [0, 64], sizes = [8, 32], strides = [1, 1]} : vector<8x96xf32> to vector<8x32xf32>
    %601 = vector.extract_strided_slice %582 {offsets = [0, 64], sizes = [8, 32], strides = [1, 1]} : vector<8x96xf32> to vector<8x32xf32>
    %602 = vector.broadcast %7 : vector<1x32xf32> to vector<8x32xf32>
    %603 = arith.addf %601, %602 : vector<8x32xf32>
    %604 = arith.mulf %591, %603 : vector<8x32xf32>
    %605 = arith.addf %600, %604 : vector<8x32xf32>
    %606 = math.tanh %605 : vector<8x32xf32>
    %cst_103 = arith.constant 1.000000e+00 : f32
    %607 = vector.broadcast %cst_103 : f32 to vector<8x32xf32>
    %608 = arith.subf %607, %599 : vector<8x32xf32>
    %609 = arith.mulf %608, %606 : vector<8x32xf32>
    %610 = arith.mulf %599, %548 : vector<8x32xf32>
    %611 = arith.addf %609, %610 : vector<8x32xf32>
    %612 = tpu.concatenate %611, %575 in 1 : vector<8x32xf32>, vector<8x32xf32> -> vector<8x64xf32>
    %613 = arith.truncf %612 : vector<8x64xf32> to vector<8x64xbf16>
    %cst_104 = arith.constant dense<0.000000e+00> : vector<8x128xf32>
    %614 = tpu.matmul %613, %8, %cst_104 {dimension_numbers = #tpu.dot_dimension_numbers<[1], [0], [0], [1], [0, 0, 1, 1], [], []>} : vector<8x64xbf16>, vector<64x128xbf16>, vector<8x128xf32> -> vector<8x128xf32>
    %615 = vector.broadcast %9 : vector<1x128xf32> to vector<8x128xf32>
    %616 = arith.addf %614, %615 : vector<8x128xf32>
    %617 = vector.extract_strided_slice %616 {offsets = [0, 0], sizes = [8, 32], strides = [1, 1]} : vector<8x128xf32> to vector<8x32xf32>
    %618 = arith.negf %617 : vector<8x32xf32>
    %619 = math.exp %618 : vector<8x32xf32>
    %cst_105 = arith.constant 1.000000e+00 : f32
    %620 = vector.broadcast %cst_105 : f32 to vector<8x32xf32>
    %621 = arith.addf %620, %619 : vector<8x32xf32>
    %622 = arith.divf %620, %621 : vector<8x32xf32>
    %623 = vector.extract_strided_slice %616 {offsets = [0, 32], sizes = [8, 32], strides = [1, 1]} : vector<8x128xf32> to vector<8x32xf32>
    %624 = arith.negf %623 : vector<8x32xf32>
    %625 = math.exp %624 : vector<8x32xf32>
    %cst_106 = arith.constant 1.000000e+00 : f32
    %626 = vector.broadcast %cst_106 : f32 to vector<8x32xf32>
    %627 = arith.addf %626, %625 : vector<8x32xf32>
    %628 = arith.divf %626, %627 : vector<8x32xf32>
    %629 = vector.extract_strided_slice %616 {offsets = [0, 64], sizes = [8, 32], strides = [1, 1]} : vector<8x128xf32> to vector<8x32xf32>
    %630 = vector.extract_strided_slice %616 {offsets = [0, 96], sizes = [8, 32], strides = [1, 1]} : vector<8x128xf32> to vector<8x32xf32>
    %631 = arith.mulf %622, %630 : vector<8x32xf32>
    %632 = arith.addf %629, %631 : vector<8x32xf32>
    %633 = math.tanh %632 : vector<8x32xf32>
    %cst_107 = arith.constant 1.000000e+00 : f32
    %634 = vector.broadcast %cst_107 : f32 to vector<8x32xf32>
    %635 = arith.subf %634, %628 : vector<8x32xf32>
    %636 = arith.mulf %635, %633 : vector<8x32xf32>
    %637 = arith.mulf %628, %575 : vector<8x32xf32>
    %638 = arith.addf %636, %637 : vector<8x32xf32>
    %639 = arith.truncf %638 : vector<8x32xf32> to vector<8x32xbf16>
    %640 = vector.extract_strided_slice %10 {offsets = [9, 0, 0], sizes = [1, 32, 1], strides = [1, 1, 1]} : vector<10x32x1xbf16> to vector<1x32x1xbf16>
    %641 = vector.shape_cast %640 : vector<1x32x1xbf16> to vector<32x1xbf16>
    %cst_108 = arith.constant dense<0.000000e+00> : vector<8x1xf32>
    %642 = tpu.matmul %639, %641, %cst_108 {dimension_numbers = #tpu.dot_dimension_numbers<[1], [0], [0], [1], [0, 0, 1, 1], [], []>} : vector<8x32xbf16>, vector<32x1xbf16>, vector<8x1xf32> -> vector<8x1xf32>
    %643 = arith.addf %580, %642 : vector<8x1xf32>
    %c0_109 = arith.constant 0 : index
    %c0_110 = arith.constant 0 : index
    %644 = vector.load %arg8[%c0_109, %c0_110] : memref<1x1xf32, #tpu.memory_space<vmem>>, vector<1x1xf32>
    %645 = vector.broadcast %644 : vector<1x1xf32> to vector<8x1xf32>
    %646 = arith.addf %643, %645 : vector<8x1xf32>
    %c0_111 = arith.constant 0 : index
    %c0_112 = arith.constant 0 : index
    %647 = vector.load %arg9[%c0_111, %c0_112] : memref<8x1xf32, #tpu.memory_space<vmem>>, vector<8x1xf32>
    tpu.vector_store %arg9[%c0_111, %c0_112], %646 {strides = array<i32>} : memref<8x1xf32, #tpu.memory_space<vmem>>, vector<8x1xf32>,
    return
  }
}

</mosaic_0001>

<bundles_post_ra>
// kernel: gru_reg_forward.1
= control target key start
LH: loop header
LB: loop body
LE: loop exit
PB: predicated region body
PF: predicated region fallthrough
CT: control target
= control target key end

     0   :  { %vm94_vm0 = vcmask 1041408   ;;  %v3037_v0 = vmov 0.0   ;;  %vm3038_vm1 = vmmov 0   ;;  %vm78_vm2 = vcmask 31744   ;;  %s3039_s18 = smov 64   ;;  %s3041_s24 = smov 96   ;;  %s3790_s3 = inlined_call_operand.vmem [shape: bf16[32,96], index: 3, kind: input, shape index: {}]   ;;  %s3791_s1 = inlined_call_operand.vmem [shape: bf16[4,96], index: 1, kind: input, shape index: {}]   ;;  %s3792_s0 = inlined_call_operand.vmem [shape: bf16[80,4], index: 0, kind: input, shape index: {}]   ;;  %s3793_s4 = inlined_call_operand.vmem [shape: f32[1,32], index: 4, kind: input, shape index: {}]   ;;  %s3794_s2 = inlined_call_operand.vmem [shape: f32[1,96], index: 2, kind: input, shape index: {}]   ;;  %s3795_s5 = inlined_call_operand.vmem [shape: bf16[64,128], index: 5, kind: input, shape index: {}]   ;;  %s3796_s6 = inlined_call_operand.vmem [shape: f32[1,128], index: 6, kind: input, shape index: {}]   ;;  %s3797_s7 = inlined_call_operand.vmem [shape: bf16[10,32,1], index: 7, kind: input, shape index: {}]   ;;  %s3798_s8 = inlined_call_operand.<no memory space> [shape: f32[1,1], index: 8, kind: input, shape index: {}]   ;;  %s3799_s9 = inlined_call_operand.vmem [shape: f32[8,1], index: 9, kind: output, shape index: {}]  }
   0x1   :  { %2592 = vmatprep.subr.bf16.mxu1 %v3037_v0  ;;  %v3097_v1 = vld [vmem:[%s3790_s3] sm:$0xff]   ;;  %2570 = vmatprep.subr.bf16.mxu0 %v3037_v0  ;;  %v3111_v4 = vld [vmem:[%s3790_s3 + $0x8] sm:$0xff]   ;;  %v3040_v7 = vmov 0   ;;  %v3161_v32 = vld [vmem:[%s3795_s5 + $0x10] sm:$0xff]   ;;  %vm237_vm3 = vcmask 261120   ;;  %vm352_vm4 = vcmask 523264  }
   0x2   :  { %v45_v2 = vld [vmem:[%s3791_s1] sm:$0x3]  ;;  %2572 = vmatprep.mubr.msk.bf16.mxu0 %vm3038_vm1, %v3037_v0  ;;  %2596 = vmatprep.mubr.msk.bf16.mxu1 %vm3038_vm1, %v3037_v0  ;;  %v3151_v30 = vld [vmem:[%s3795_s5 + $0x8] sm:$0xff]   ;;  %v3170_v33 = vld [vmem:[%s3795_s5 + $0x18] sm:$0xff]   ;;  %s3042_s10 = smov 32   ;;  %vm2359_vm5 = vcmask 7168  }
   0x3   :  { %2593 = vmatpush3.bf16.msra.mxu1 %v3097_v1  ;;  %v96_v3 = vsel %vm94_vm0, %v45_v2, 0  ;;  %v2880_v5 = vld [vmem:[%s3792_s0] sm:$0xff]  }
   0x4   :  { %2571 = vmatpush3.bf16.msra.mxu0 %v96_v3  ;;  %2594 = vmatprep.subr.bf16.mxu1 %v3037_v0  ;;  %v2379_v6 = vld [vmem:[%s3793_s4] ss:$0 sm:$0xff] }
   0x5   :  { %293 = vrot.lane.b32.xlu0 %v2379_v6, %s3039_s18  ;;  %2620 = vmatprep.subr.bf16.mxu0 %v3037_v0  ;;  %v3138_v18 = vld [vmem:[%s3794_s2] ss:$0 sm:$0xff] }
   0x6   :  { %v3145_v29 = vld [vmem:[%s3795_s5] sm:$0xff]  }
   0x7   :  { %2595 = vmatpush3.bf16.msra.mxu1 %v3111_v4  ;;  %2573 = vmatmul.mubr.msk.bf16.vlgmr.msra.gmra.mrb[0].mxu0 %vm78_vm2, %v2880_v5  ;;  %v3200_v44 = vld [vmem:[%s3796_s6] ss:$0 sm:$0xff] }
   0x8   :  { %2600 = vmatprep.subr.bf16.mxu1 %v3037_v0  ;;  %2576 = vmatprep.mubr.msk.bf16.mxu0 %vm3038_vm1, %v3037_v0 }
   0x9   :  { %2621 = vmatpush3.bf16.msra.mxu0 %v3145_v29 }
   0xa   :  { %2597 = vmatmul.mubr.bf16.vlgmr.msra.gmra.mrb[0].mxu1 %v3040_v7  ;;  %2622 = vmatprep.subr.bf16.mxu0 %v3037_v0 }
   0xb   :  { %2608 = vmatprep.mubr.msk.bf16.mxu1 %vm3038_vm1, %v3037_v0  ;;  %2601 = vmatpush3.bf16.msra.mxu1 %v3145_v29 }
   0xc   :  { %2602 = vmatprep.subr.bf16.mxu1 %v3037_v0 }
   0xd   :  { %2623 = vmatpush3.bf16.msra.mxu0 %v3151_v30 }
   0xe   :  { %2624 = vmatprep.subr.bf16.mxu0 %v3037_v0 }
   0xf   :  { %2603 = vmatpush3.bf16.msra.mxu1 %v3151_v30 }
  0x10   :  { %2604 = vmatprep.subr.bf16.mxu1 %v3037_v0 }
  0x11   :  { %2625 = vmatpush3.bf16.msra.mxu0 %v3161_v32 }
  0x12   :  { %2626 = vmatprep.subr.bf16.mxu0 %v3037_v0 }
  0x13   :  { %2605 = vmatpush3.bf16.msra.mxu1 %v3161_v32 }
  0x14   :  { %2606 = vmatprep.subr.bf16.mxu1 %v3037_v0 }
  0x15   :  { %2627 = vmatpush3.bf16.msra.mxu0 %v3170_v33 }
  0x16   :  { %2648 = vmatprep.subr.bf16.mxu0 %v3037_v0 }
  0x17   :  { %2607 = vmatpush3.bf16.msra.mxu1 %v3170_v33 }
  0x18   :  { %2612 = vmatprep.subr.bf16.mxu1 %v3037_v0 }
  0x77   :  { %v3129_v9 = vpop.permute.xlu0 %293 }
  0xda   :  { %v132_v8 = vpop.f32.mrb[0].mxu0 }
  0xdb   :  { %v2574_v10 = vpop.f32.mrb[1].mxu0  ;;  %v133_v19 = vadd.f32 %v3138_v18, %v132_v8 }
  0xdc   :  { %v3131_v11 = vpop.f32.mrb[2].mxu0 }
  0xdd   :  { %v275_v12 = vpop.f32.mrb[0].mxu1  ;;  %v2575_v13 = vpop.f32.mrb[3].mxu0  ;;  %v136_v56 = vadd.f32 %v3138_v18, %v3131_v11 }
  0xde   :  { %v296_v14 = vadd.f32 %v3129_v9, %v275_v12  ;;  %v2598_v15 = vpop.f32.mrb[1].mxu1  ;;  %v281_v20 = vadd.f32 %v275_v12, %v133_v19 }
  0xdf   :  { %v278_v16 = vpop.f32.mrb[2].mxu1 }
  0xe0   :  { %298 = vrot.lane.b32.xlu0 %v296_v14, %s3039_s18  ;;  %v2599_v17 = vpop.f32.mrb[3].mxu1  ;;  %v2378_v21 = vmul.f32 -1.442695, %v281_v20  ;;  %v2885_v14 = vld [vmem:[%s3792_s0 + $0x8] sm:$0xff]   ;;  %v2886_v16 = vld [vmem:[%s3792_s0 + $0x10] sm:$0xff]  }
  0xe1   :  { %2577 = vmatmul.mubr.msk.bf16.gmra.mrb[4].mxu0 %vm78_vm2, %v2885_v14  ;;  %v2887_v17 = vld [vmem:[%s3792_s0 + $0x18] sm:$0xff]  }
  0xe2   :  { %2909 = vpow2.f32 %v2378_v21  ;;  %2580 = vmatprep.mubr.msk.bf16.mxu0 %vm3038_vm1, %v3037_v0 }
  0xe9   :  { %2581 = vmatmul.mubr.msk.bf16.gmra.mrb[8].mxu0 %vm78_vm2, %v2886_v16 }
  0xea   :  { %2584 = vmatprep.mubr.msk.bf16.mxu0 %vm3038_vm1, %v3037_v0 }
  0xec   :  { %v2910_v22 = vpop.eup %2909 }
  0xed   :  { %v285_v23 = vadd.f32 1.0, %v2910_v22 }
  0xef   :  { %2911 = vrcp.f32 %v285_v23 }
  0xf1   :  { %2585 = vmatmul.mubr.msk.bf16.gmra.mrb[12].mxu0 %vm78_vm2, %v2887_v17 }
  0xf2   :  { %2588 = vmatprep.mubr.msk.bf16.mxu0 %vm3038_vm1, %v3037_v0 }
  0xf9   :  { %v2912_v24 = vpop.eup %2911 }
  0xfa   :  { %v308_v34 = vsub.f32 1.0, %v2912_v24  ;;  %v314_v36 = vmul.f32 0.0, %v2912_v24 }
 0x152   :  { %v299_v25 = vpop.permute.xlu0 %298 }
 0x153   :  { %v301_v26 = vmul.f32 %v2912_v24, %v299_v25 }
 0x155   :  { %303 = vrot.lane.b32.xlu1 %v301_v26, %s3039_s18 }
 0x1b4   :  { %v140_v26 = vpop.f32.mrb[4].mxu0 }
 0x1c7   :  { %v304_v27 = vpop.permute.xlu1 %303 }
 0x1c8   :  { %v306_v28 = vadd.f32 %v304_v27, %v133_v19  ;;  %v2888_v19 = vld [vmem:[%s3792_s0 + $0x20] sm:$0xff]   ;;  %v2578_v27 = vpop.f32.mrb[5].mxu0 }
 0x1c9   :  { %2589 = vmatmul.mubr.msk.bf16.gmra.mrb[16].mxu0 %vm78_vm2, %v2888_v19  ;;  %v2889_v27 = vld [vmem:[%s3797_s7 + $0x10] sm:$0xff]  }
 0x1ca   :  { %2913 = vtanh.f32 %v306_v28  ;;  %2628 = vmatprep.mubr.msk.bf16.mxu0 %vm3038_vm1, %v3037_v0  ;;  %v3244_v28 = vpop.f32.mrb[6].mxu0 }
 0x1d4   :  { %v2914_v31 = vpop.eup %2913 }
 0x1d5   :  { %310 = vrot.lane.b32.xlu1 %v2914_v31, %s3041_s24  ;;  %v2579_v31 = vpop.f32.mrb[7].mxu0 }
 0x1d6   :  { %v2890_v31 = vld [vmem:[%s3797_s7 + $0x18] sm:$0xff]  }
 0x247   :  { %v311_v35 = vpop.permute.xlu1 %310 }
 0x248   :  { %v313_v37 = vmul.f32 %v311_v35, %v308_v34  ;;  %v3246_v34 = vpop.f32.mrb[8].mxu0 }
 0x249   :  { %v2582_v35 = vpop.f32.mrb[9].mxu0 }
 0x24a   :  { %v3179_v38 = vadd.f32 %v314_v36, %v313_v37  ;;  %v3248_v36 = vpop.f32.mrb[10].mxu0 }
 0x24b   :  { %v2583_v37 = vpop.f32.mrb[11].mxu0 }
 0x24c   :  { %317 = vrot.lane.b32.xlu0 %v3179_v38, %s3041_s24  ;;  %v422_v39 = vpack.c.bf16 %v3179_v38, %v3179_v38 }
 0x24e   :  { %424 = vrot.lane.b32.xlu1 %v422_v39, %s3041_s24 }
 0x2be   :  { %v318_v40 = vpop.permute.xlu0 %317 }
 0x2bf   :  { %v320_v41 = vsel %vm237_vm3, %v318_v40, 0.0 }
 0x2c0   :  { %v321_v42 = vpack.c.bf16 %v320_v41, %v320_v41  ;;  %v425_v43 = vpop.permute.xlu1 %424 }
 0x2c2   :  { %2609 = vmatmul.mubr.msk.bf16.vlgmr.msra.gmra.mrb[4].mxu1 %vm352_vm4, %v321_v42 }
 0x2c3   :  { %2613 = vmatpush3.bf16.msra.mxu1 %v3097_v1  ;;  %2616 = vmatprep.mubr.msk.bf16.mxu1 %vm3038_vm1, %v3037_v0 }
 0x2c4   :  { %2614 = vmatprep.subr.bf16.mxu1 %v3037_v0 }
 0x2c7   :  { %2615 = vmatpush3.bf16.msra.mxu1 %v3111_v4 }
 0x2c8   :  { %2632 = vmatprep.subr.bf16.mxu1 %v3037_v0 }
 0x2ca   :  { %2617 = vmatmul.mubr.msk.bf16.vlgmr.msra.gmra.mrb[8].mxu1 %vm237_vm3, %v425_v43 }
 0x2cb   :  { %2636 = vmatprep.mubr.msk.bf16.mxu1 %vm3038_vm1, %v3037_v0  ;;  %2633 = vmatpush3.bf16.msra.mxu1 %v2889_v27 }
 0x2cc   :  { %2634 = vmatprep.subr.bf16.mxu1 %v3037_v0 }
 0x2cf   :  { %2635 = vmatpush3.bf16.msra.mxu1 %v2890_v31 }
 0x2d0   :  { %2640 = vmatprep.subr.bf16.mxu1 %v3037_v0 }
 0x395   :  { %v390_v45 = vpop.f32.mrb[4].mxu1 }
 0x396   :  { %v391_v46 = vadd.f32 %v3200_v44, %v390_v45  ;;  %v2610_v47 = vpop.f32.mrb[5].mxu1 }
 0x397   :  { %v393_v48 = vpop.f32.mrb[6].mxu1 }
 0x398   :  { %v2611_v49 = vpop.f32.mrb[7].mxu1  ;;  %403 = vrot.lane.b32.xlu1 %v391_v46, %s3042_s10  ;;  %v2386_v55 = vmul.f32 -1.442695, %v391_v46 }
 0x39a   :  { %2915 = vpow2.f32 %v2386_v55 }
 0x39d   :  { %v463_v50 = vpop.f32.mrb[8].mxu1 }
 0x39e   :  { %v476_v51 = vadd.f32 %v463_v50, %v3129_v9  ;;  %v2618_v52 = vpop.f32.mrb[9].mxu1  ;;  %v469_v57 = vadd.f32 %v463_v50, %v136_v56 }
 0x39f   :  { %v466_v53 = vpop.f32.mrb[10].mxu1 }
 0x3a0   :  { %478 = vrot.lane.b32.xlu0 %v476_v51, %s3039_s18  ;;  %v2619_v54 = vpop.f32.mrb[11].mxu1  ;;  %v2388_v58 = vmul.f32 -1.442695, %v469_v57 }
 0x3a2   :  { %2917 = vpow2.f32 %v2388_v58 }
 0x3a4   :  { %v2916_v59 = vpop.eup %2915 }
 0x3a5   :  { %v399_v60 = vadd.f32 1.0, %v2916_v59 }
 0x3a7   :  { %2919 = vrcp.f32 %v399_v60 }
 0x3ac   :  { %v2918_v61 = vpop.eup %2917 }
 0x3ad   :  { %v473_v62 = vadd.f32 1.0, %v2918_v61 }
 0x3af   :  { %2921 = vrcp.f32 %v473_v62 }
 0x3b1   :  { %v2920_v63 = vpop.eup %2919 }
 0x3b2   :  { %v413_v43 = vsub.f32 1.0, %v2920_v63 }
 0x3b9   :  { %v2922_v5 = vpop.eup %2921 }
 0x3ba   :  { %v488_v20 = vsub.f32 1.0, %v2922_v5  ;;  %v494_v22 = vmul.f32 %v2922_v5, %v3179_v38  ;;  %v3250_v38 = vpop.f32.mrb[12].mxu0 }
 0x3bb   :  { %v2586_v39 = vpop.f32.mrb[13].mxu0 }
 0x3bc   :  { %v3252_v40 = vpop.f32.mrb[14].mxu0 }
 0x3bd   :  { %v2587_v42 = vpop.f32.mrb[15].mxu0 }
 0x3be   :  { %v3254_v47 = vpop.f32.mrb[16].mxu0 }
 0x3bf   :  { %v2590_v48 = vpop.f32.mrb[17].mxu0 }
 0x3c0   :  { %v3258_v50 = vpop.f32.mrb[18].mxu0 }
 0x3c1   :  { %v2591_v52 = vpop.f32.mrb[19].mxu0 }
 0x40a   :  { %v404_v2 = vpop.permute.xlu1 %403 }
 0x40b   :  { %v406_v3 = vmul.f32 %v2920_v63, %v404_v2 }
 0x40d   :  { %408 = vrot.lane.b32.xlu1 %v406_v3, %s3039_s18 }
 0x412   :  { %v479_v6 = vpop.permute.xlu0 %478 }
 0x413   :  { %v481_v7 = vmul.f32 %v2922_v5, %v479_v6  ;;  %v141_v6 = vadd.f32 %v3138_v18, %v140_v26 }
 0x415   :  { %483 = vrot.lane.b32.xlu0 %v481_v7, %s3039_s18 }
 0x47f   :  { %v409_v8 = vpop.permute.xlu1 %408 }
 0x480   :  { %v411_v10 = vadd.f32 %v409_v8, %v391_v46  ;;  %v419_v46 = vmul.f32 0.0, %v2920_v63 }
 0x482   :  { %2923 = vtanh.f32 %v411_v10 }
 0x487   :  { %v484_v11 = vpop.permute.xlu0 %483 }
 0x488   :  { %v486_v12 = vadd.f32 %v484_v11, %v136_v56 }
 0x48a   :  { %2925 = vtanh.f32 %v486_v12 }
 0x48c   :  { %v2924_v13 = vpop.eup %2923 }
 0x48d   :  { %415 = vrot.lane.b32.xlu1 %v2924_v13, %s3041_s24 }
 0x494   :  { %v2926_v15 = vpop.eup %2925 }
 0x495   :  { %490 = vrot.lane.b32.xlu0 %v2926_v15, %s3041_s24 }
 0x4ff   :  { %v416_v41 = vpop.permute.xlu1 %415 }
 0x500   :  { %v418_v45 = vmul.f32 %v416_v41, %v413_v43 }
 0x502   :  { %v3256_v49 = vadd.f32 %v419_v46, %v418_v45 }
 0x504   :  { %v421_v37 = vpack.c.bf16 %v3256_v49, %v3256_v49 }
 0x507   :  { %v491_v21 = vpop.permute.xlu0 %490 }
 0x508   :  { %v493_v23 = vmul.f32 %v491_v21, %v488_v20 }
 0x50a   :  { %v3237_v24 = vadd.f32 %v494_v22, %v493_v23 }
 0x50c   :  { %497 = vrot.lane.b32.xlu0 %v3237_v24, %s3041_s24  ;;  %v687_v25 = vpack.c.bf16 %v3237_v24, %v3237_v24 }
 0x50e   :  { %689 = vrot.lane.b32.xlu1 %v687_v25, %s3041_s24 }
 0x57e   :  { %v498_v51 = vpop.permute.xlu0 %497 }
 0x57f   :  { %v500_v53 = vsel %vm237_vm3, %v498_v51, %v3256_v49 }
 0x580   :  { %v501_v54 = vpack.c.bf16 %v500_v53, %v500_v53  ;;  %v690_v55 = vpop.permute.xlu1 %689 }
 0x582   :  { %2629 = vmatmul.mubr.msk.bf16.vlgmr.msra.gmra.mrb[20].mxu0 %vm352_vm4, %v501_v54 }
 0x583   :  { %2649 = vmatpush3.bf16.msra.mxu0 %v3097_v1  ;;  %2652 = vmatprep.mubr.msk.bf16.mxu0 %vm3038_vm1, %v3037_v0 }
 0x584   :  { %2650 = vmatprep.subr.bf16.mxu0 %v3037_v0 }
 0x587   :  { %2651 = vmatpush3.bf16.msra.mxu0 %v3111_v4 }
 0x588   :  { %2668 = vmatprep.subr.bf16.mxu0 %v3037_v0 }
 0x58a   :  { %2653 = vmatmul.mubr.msk.bf16.vlgmr.msra.gmra.mrb[24].mxu0 %vm237_vm3, %v690_v55 }
 0x58b   :  { %2672 = vmatprep.mubr.msk.bf16.mxu0 %vm3038_vm1, %v3037_v0 }
 0x655   :  { %v539_v56 = vpop.f32.mrb[20].mxu0 }
 0x656   :  { %v540_v57 = vadd.f32 %v3200_v44, %v539_v56  ;;  %v2630_v58 = vpop.f32.mrb[21].mxu0  ;;  %v2892_v56 = vld [vmem:[%s3797_s7 + $0x8] sm:$0xff]  }
 0x657   :  { %v542_v59 = vpop.f32.mrb[22].mxu0 }
 0x658   :  { %552 = vrot.lane.b32.xlu0 %v540_v57, %s3042_s10  ;;  %v2631_v60 = vpop.f32.mrb[23].mxu0  ;;  %v2390_v5 = vmul.f32 -1.442695, %v540_v57 }
 0x65a   :  { %2927 = vpow2.f32 %v2390_v5 }
 0x65d   :  { %v728_v61 = vpop.f32.mrb[24].mxu0 }
 0x65e   :  { %v741_v62 = vadd.f32 %v728_v61, %v3129_v9  ;;  %v2654_v63 = vpop.f32.mrb[25].mxu0  ;;  %v734_v7 = vadd.f32 %v728_v61, %v141_v6 }
 0x65f   :  { %v731_v2 = vpop.f32.mrb[26].mxu0 }
 0x660   :  { %743 = vrot.lane.b32.xlu1 %v741_v62, %s3039_s18  ;;  %v2655_v3 = vpop.f32.mrb[27].mxu0  ;;  %v2398_v8 = vmul.f32 -1.442695, %v734_v7 }
 0x662   :  { %2929 = vpow2.f32 %v2398_v8 }
 0x664   :  { %v2928_v10 = vpop.eup %2927 }
 0x665   :  { %v548_v11 = vadd.f32 1.0, %v2928_v10 }
 0x667   :  { %2931 = vrcp.f32 %v548_v11 }
 0x66c   :  { %v2930_v12 = vpop.eup %2929 }
 0x66d   :  { %v738_v13 = vadd.f32 1.0, %v2930_v12 }
 0x66f   :  { %2933 = vrcp.f32 %v738_v13 }
 0x671   :  { %v2932_v14 = vpop.eup %2931 }
 0x672   :  { %v562_v39 = vsub.f32 1.0, %v2932_v14  ;;  %v568_v42 = vmul.f32 %v2932_v14, %v3256_v49  ;;  %v2891_v49 = vld [vmem:[%s3797_s7] sm:$0xff]  }
 0x679   :  { %v2934_v17 = vpop.eup %2933 }
 0x67a   :  { %v753_v48 = vsub.f32 1.0, %v2934_v17  ;;  %v759_v52 = vmul.f32 %v2934_v17, %v3237_v24 }
 0x6ca   :  { %v553_v15 = vpop.permute.xlu0 %552 }
 0x6cb   :  { %v555_v16 = vmul.f32 %v2932_v14, %v553_v15 }
 0x6cd   :  { %557 = vrot.lane.b32.xlu0 %v555_v16, %s3039_s18 }
 0x6d2   :  { %v744_v19 = vpop.permute.xlu1 %743 }
 0x6d3   :  { %v746_v20 = vmul.f32 %v2934_v17, %v744_v19 }
 0x6d5   :  { %748 = vrot.lane.b32.xlu1 %v746_v20, %s3039_s18 }
 0x73f   :  { %v558_v21 = vpop.permute.xlu0 %557 }
 0x740   :  { %v560_v22 = vadd.f32 %v558_v21, %v540_v57 }
 0x742   :  { %2935 = vtanh.f32 %v560_v22 }
 0x747   :  { %v749_v23 = vpop.permute.xlu1 %748 }
 0x748   :  { %v751_v25 = vadd.f32 %v749_v23, %v141_v6  ;;  %v2893_v23 = vld [vmem:[%s3797_s7 + $0x20] sm:$0xff]  }
 0x749   :  { %2669 = vmatpush3.bf16.msra.mxu0 %v2893_v23 }
 0x74a   :  { %2937 = vtanh.f32 %v751_v25  ;;  %v2894_v25 = vld [vmem:[%s3797_s7 + $0x28] sm:$0xff]   ;;  %2670 = vmatprep.subr.bf16.mxu0 %v3037_v0 }
 0x74c   :  { %v2936_v26 = vpop.eup %2935 }
 0x74d   :  { %564 = vrot.lane.b32.xlu0 %v2936_v26, %s3041_s24  ;;  %2671 = vmatpush3.bf16.msra.mxu0 %v2894_v25 }
 0x74e   :  { %2676 = vmatprep.subr.bf16.mxu0 %v3037_v0 }
 0x754   :  { %v2938_v35 = vpop.eup %2937 }
 0x755   :  { %755 = vrot.lane.b32.xlu1 %v2938_v35, %s3041_s24 }
 0x759   :  { %630 = vrot.lane.b32.xlu1 %v421_v37, %s3041_s24 }
 0x7bf   :  { %v565_v41 = vpop.permute.xlu0 %564 }
 0x7c0   :  { %v567_v43 = vmul.f32 %v565_v41, %v562_v39 }
 0x7c2   :  { %v3293_v45 = vadd.f32 %v568_v42, %v567_v43 }
 0x7c4   :  { %v570_v46 = vpack.c.bf16 %v3293_v45, %v3293_v45 }
 0x7c6   :  { %572 = vrot.lane.b32.xlu0 %v570_v46, %s3041_s24 }
 0x7c7   :  { %v756_v51 = vpop.permute.xlu1 %755 }
 0x7c8   :  { %v758_v53 = vmul.f32 %v756_v51, %v753_v48 }
 0x7ca   :  { %v3299_v54 = vadd.f32 %v759_v52, %v758_v53 }
 0x7cb   :  { %v631_v24 = vpop.permute.xlu1 %630 }
 0x7cc   :  { %762 = vrot.lane.b32.xlu0 %v3299_v54, %s3041_s24  ;;  %v895_v27 = vpack.c.bf16 %v3299_v54, %v3299_v54 }
 0x838   :  { %v573_v55 = vpop.permute.xlu0 %572 }
 0x839   :  { %2637 = vmatmul.mubr.msk.bf16.vlgmr.msra.gmra.mrb[12].mxu1 %vm237_vm3, %v573_v55 }
 0x83a   :  { %2641 = vmatpush3.bf16.msra.mxu1 %v2891_v49  ;;  %2644 = vmatprep.mubr.msk.bf16.mxu1 %vm3038_vm1, %v3037_v0 }
 0x83b   :  { %2642 = vmatprep.subr.bf16.mxu1 %v3037_v0 }
 0x83e   :  { %2643 = vmatpush3.bf16.msra.mxu1 %v2892_v56  ;;  %v763_v57 = vpop.permute.xlu0 %762 }
 0x83f   :  { %2656 = vmatprep.subr.bf16.mxu1 %v3037_v0  ;;  %v765_v58 = vsel %vm237_vm3, %v763_v57, %v3293_v45 }
 0x840   :  { %v766_v59 = vpack.c.bf16 %v765_v58, %v765_v58  ;;  %v144_v58 = vadd.f32 %v3138_v18, %v3244_v28 }
 0x841   :  { %2645 = vmatmul.mubr.msk.bf16.vlgmr.msra.gmra.mrb[16].mxu1 %vm237_vm3, %v631_v24 }
 0x842   :  { %2657 = vmatpush3.bf16.msra.mxu1 %v3145_v29  ;;  %2664 = vmatprep.mubr.msk.bf16.mxu1 %vm3038_vm1, %v3037_v0 }
 0x843   :  { %2658 = vmatprep.subr.bf16.mxu1 %v3037_v0 }
 0x846   :  { %2659 = vmatpush3.bf16.msra.mxu1 %v3151_v30 }
 0x847   :  { %2660 = vmatprep.subr.bf16.mxu1 %v3037_v0 }
 0x84a   :  { %2661 = vmatpush3.bf16.msra.mxu1 %v3161_v32 }
 0x84b   :  { %2662 = vmatprep.subr.bf16.mxu1 %v3037_v0 }
 0x84e   :  { %2663 = vmatpush3.bf16.msra.mxu1 %v3170_v33 }
 0x84f   :  { %2684 = vmatprep.subr.bf16.mxu1 %v3037_v0 }
 0x851   :  { %2665 = vmatmul.mubr.msk.bf16.vlgmr.msra.gmra.mrb[20].mxu1 %vm352_vm4, %v766_v59 }
 0x852   :  { %2685 = vmatpush3.bf16.msra.mxu1 %v3145_v29  ;;  %2692 = vmatprep.mubr.msk.bf16.mxu1 %vm3038_vm1, %v3037_v0 }
 0x853   :  { %2686 = vmatprep.subr.bf16.mxu1 %v3037_v0 }
 0x856   :  { %2687 = vmatpush3.bf16.msra.mxu1 %v3151_v30 }
 0x857   :  { %2688 = vmatprep.subr.bf16.mxu1 %v3037_v0 }
 0x85a   :  { %2689 = vmatpush3.bf16.msra.mxu1 %v3161_v32 }
 0x85b   :  { %2690 = vmatprep.subr.bf16.mxu1 %v3037_v0 }
 0x85e   :  { %2691 = vmatpush3.bf16.msra.mxu1 %v3170_v33 }
 0x85f   :  { %2712 = vmatprep.subr.bf16.mxu1 %v3037_v0 }
 0x90c   :  { %v623_v60 = vpop.f32.mrb[12].mxu1 }
 0x90d   :  { %v2638_v61 = vpop.f32.mrb[13].mxu1 }
 0x90e   :  { %v626_v62 = vpop.f32.mrb[14].mxu1 }
 0x90f   :  { %v2639_v63 = vpop.f32.mrb[15].mxu1 }
 0x914   :  { %v681_v2 = vpop.f32.mrb[16].mxu1 }
 0x915   :  { %v682_v3 = vadd.f32 %v681_v2, %v623_v60  ;;  %v2646_v5 = vpop.f32.mrb[17].mxu1 }
 0x916   :  { %v684_v6 = vpop.f32.mrb[18].mxu1 }
 0x917   :  { %v2647_v7 = vpop.f32.mrb[19].mxu1 }
 0x924   :  { %v804_v8 = vpop.f32.mrb[20].mxu1 }
 0x925   :  { %v805_v10 = vadd.f32 %v3200_v44, %v804_v8  ;;  %v2666_v11 = vpop.f32.mrb[21].mxu1 }
 0x926   :  { %v807_v12 = vpop.f32.mrb[22].mxu1 }
 0x927   :  { %817 = vrot.lane.b32.xlu1 %v805_v10, %s3042_s10  ;;  %v2667_v13 = vpop.f32.mrb[23].mxu1  ;;  %v2400_v14 = vmul.f32 -1.442695, %v805_v10 }
 0x929   :  { %2939 = vpow2.f32 %v2400_v14 }
 0x933   :  { %v2940_v15 = vpop.eup %2939 }
 0x934   :  { %v813_v16 = vadd.f32 1.0, %v2940_v15 }
 0x936   :  { %2941 = vrcp.f32 %v813_v16 }
 0x940   :  { %v2942_v17 = vpop.eup %2941 }
 0x941   :  { %v827_v31 = vsub.f32 1.0, %v2942_v17  ;;  %v833_v37 = vmul.f32 %v2942_v17, %v3293_v45 }
 0x999   :  { %v818_v19 = vpop.permute.xlu1 %817 }
 0x99a   :  { %v820_v20 = vmul.f32 %v2942_v17, %v818_v19 }
 0x99c   :  { %822 = vrot.lane.b32.xlu0 %v820_v20, %s3039_s18 }
 0xa0e   :  { %v823_v21 = vpop.permute.xlu0 %822 }
 0xa0f   :  { %v825_v22 = vadd.f32 %v823_v21, %v805_v10 }
 0xa11   :  { %2943 = vtanh.f32 %v825_v22 }
 0xa1b   :  { %v2944_v26 = vpop.eup %2943 }
 0xa1c   :  { %829 = vrot.lane.b32.xlu1 %v2944_v26, %s3041_s24 }
 0xa20   :  { %897 = vrot.lane.b32.xlu1 %v895_v27, %s3041_s24 }
 0xa8e   :  { %v830_v35 = vpop.permute.xlu1 %829 }
 0xa8f   :  { %v832_v39 = vmul.f32 %v830_v35, %v827_v31 }
 0xa91   :  { %v3354_v41 = vadd.f32 %v833_v37, %v832_v39  ;;  %v2895_v37 = vld [vmem:[%s3797_s7 + $0x30] sm:$0xff]   ;;  %v2896_v39 = vld [vmem:[%s3797_s7 + $0x38] sm:$0xff]  }
 0xa92   :  { %v898_v45 = vpop.permute.xlu1 %897 }
 0xa93   :  { %v835_v42 = vpack.c.bf16 %v3354_v41, %v3354_v41 }
 0xa95   :  { %837 = vrot.lane.b32.xlu0 %v835_v42, %s3041_s24 }
 0xb07   :  { %v838_v43 = vpop.permute.xlu0 %837 }
 0xb08   :  { %2673 = vmatmul.mubr.msk.bf16.vlgmr.msra.gmra.mrb[28].mxu0 %vm237_vm3, %v838_v43 }
 0xb09   :  { %2677 = vmatpush3.bf16.msra.mxu0 %v3097_v1  ;;  %2680 = vmatprep.mubr.msk.bf16.mxu0 %vm3038_vm1, %v3037_v0 }
 0xb0a   :  { %2678 = vmatprep.subr.bf16.mxu0 %v3037_v0 }
 0xb0d   :  { %2679 = vmatpush3.bf16.msra.mxu0 %v3111_v4 }
 0xb0e   :  { %2696 = vmatprep.subr.bf16.mxu0 %v3037_v0 }
 0xb10   :  { %2681 = vmatmul.mubr.msk.bf16.vlgmr.msra.gmra.mrb[32].mxu0 %vm237_vm3, %v898_v45 }
 0xb11   :  { %2700 = vmatprep.mubr.msk.bf16.mxu0 %vm3038_vm1, %v3037_v0  ;;  %2697 = vmatpush3.bf16.msra.mxu0 %v2895_v37 }
 0xb12   :  { %2698 = vmatprep.subr.bf16.mxu0 %v3037_v0 }
 0xb15   :  { %2699 = vmatpush3.bf16.msra.mxu0 %v2896_v39 }
 0xb16   :  { %2704 = vmatprep.subr.bf16.mxu0 %v3037_v0 }
 0xbdb   :  { %v888_v46 = vpop.f32.mrb[28].mxu0 }
 0xbdc   :  { %v3369_v48 = vadd.f32 %v888_v46, %v682_v3  ;;  %v2674_v51 = vpop.f32.mrb[29].mxu0 }
 0xbdd   :  { %v891_v52 = vpop.f32.mrb[30].mxu0 }
 0xbde   :  { %v2675_v53 = vpop.f32.mrb[31].mxu0 }
 0xbe3   :  { %v936_v49 = vpop.f32.mrb[32].mxu0 }
 0xbe4   :  { %v949_v55 = vadd.f32 %v936_v49, %v3129_v9  ;;  %v2682_v56 = vpop.f32.mrb[33].mxu0  ;;  %v942_v59 = vadd.f32 %v936_v49, %v144_v58 }
 0xbe5   :  { %v939_v24 = vpop.f32.mrb[34].mxu0 }
 0xbe6   :  { %951 = vrot.lane.b32.xlu0 %v949_v55, %s3039_s18  ;;  %v2683_v57 = vpop.f32.mrb[35].mxu0  ;;  %v2405_v60 = vmul.f32 -1.442695, %v942_v59 }
 0xbe8   :  { %2945 = vpow2.f32 %v2405_v60 }
 0xbf2   :  { %v2946_v61 = vpop.eup %2945 }
 0xbf3   :  { %v946_v62 = vadd.f32 1.0, %v2946_v61 }
 0xbf5   :  { %2947 = vrcp.f32 %v946_v62 }
 0xbff   :  { %v2948_v63 = vpop.eup %2947 }
 0xc00   :  { %v961_v8 = vsub.f32 1.0, %v2948_v63  ;;  %v967_v28 = vmul.f32 %v2948_v63, %v3299_v54 }
 0xc58   :  { %v952_v2 = vpop.permute.xlu0 %951 }
 0xc59   :  { %v954_v3 = vmul.f32 %v2948_v63, %v952_v2  ;;  %v149_v63 = vadd.f32 %v3138_v18, %v3246_v34 }
 0xc5b   :  { %956 = vrot.lane.b32.xlu1 %v954_v3, %s3039_s18 }
 0xccd   :  { %v957_v5 = vpop.permute.xlu1 %956 }
 0xcce   :  { %v959_v6 = vadd.f32 %v957_v5, %v144_v58 }
 0xcd0   :  { %2949 = vtanh.f32 %v959_v6 }
 0xcda   :  { %v2950_v7 = vpop.eup %2949 }
 0xcdb   :  { %963 = vrot.lane.b32.xlu0 %v2950_v7, %s3041_s24 }
 0xd4d   :  { %v964_v10 = vpop.permute.xlu0 %963 }
 0xd4e   :  { %v966_v11 = vmul.f32 %v964_v10, %v961_v8 }
 0xd50   :  { %v3378_v12 = vadd.f32 %v967_v28, %v966_v11 }
 0xd52   :  { %970 = vrot.lane.b32.xlu1 %v3378_v12, %s3041_s24  ;;  %v1103_v43 = vpack.c.bf16 %v3378_v12, %v3378_v12 }
 0xdc4   :  { %v971_v13 = vpop.permute.xlu1 %970 }
 0xdc5   :  { %v973_v14 = vsel %vm237_vm3, %v971_v13, %v3354_v41 }
 0xdc6   :  { %v974_v15 = vpack.c.bf16 %v973_v14, %v973_v14 }
 0xdc8   :  { %2693 = vmatmul.mubr.msk.bf16.vlgmr.msra.gmra.mrb[24].mxu1 %vm352_vm4, %v974_v15 }
 0xdc9   :  { %2713 = vmatpush3.bf16.msra.mxu1 %v3145_v29  ;;  %2720 = vmatprep.mubr.msk.bf16.mxu1 %vm3038_vm1, %v3037_v0 }
 0xdca   :  { %2714 = vmatprep.subr.bf16.mxu1 %v3037_v0 }
 0xdcd   :  { %2715 = vmatpush3.bf16.msra.mxu1 %v3151_v30 }
 0xdce   :  { %2716 = vmatprep.subr.bf16.mxu1 %v3037_v0 }
 0xdd1   :  { %2717 = vmatpush3.bf16.msra.mxu1 %v3161_v32 }
 0xdd2   :  { %2718 = vmatprep.subr.bf16.mxu1 %v3037_v0 }
 0xdd5   :  { %2719 = vmatpush3.bf16.msra.mxu1 %v3170_v33 }
 0xdd6   :  { %2740 = vmatprep.subr.bf16.mxu1 %v3037_v0 }
 0xe9b   :  { %v1012_v54 = vpop.f32.mrb[24].mxu1 }
 0xe9c   :  { %v1013_v16 = vadd.f32 %v3200_v44, %v1012_v54  ;;  %v2694_v17 = vpop.f32.mrb[25].mxu1 }
 0xe9d   :  { %v1015_v19 = vpop.f32.mrb[26].mxu1 }
 0xe9e   :  { %1025 = vrot.lane.b32.xlu0 %v1013_v16, %s3042_s10  ;;  %v2695_v20 = vpop.f32.mrb[27].mxu1  ;;  %v2407_v21 = vmul.f32 -1.442695, %v1013_v16 }
 0xea0   :  { %2951 = vpow2.f32 %v2407_v21 }
 0xeaa   :  { %v2952_v22 = vpop.eup %2951 }
 0xeab   :  { %v1021_v23 = vadd.f32 1.0, %v2952_v22 }
 0xead   :  { %2953 = vrcp.f32 %v1021_v23 }
 0xeb7   :  { %v2954_v25 = vpop.eup %2953 }
 0xeb8   :  { %v1035_v45 = vsub.f32 1.0, %v2954_v25  ;;  %v1041_v51 = vmul.f32 %v2954_v25, %v3354_v41 }
 0xf10   :  { %v1026_v26 = vpop.permute.xlu0 %1025 }
 0xf11   :  { %v1028_v27 = vmul.f32 %v2954_v25, %v1026_v26 }
 0xf13   :  { %1030 = vrot.lane.b32.xlu1 %v1028_v27, %s3039_s18 }
 0xf85   :  { %v1031_v31 = vpop.permute.xlu1 %1030 }
 0xf86   :  { %v1033_v35 = vadd.f32 %v1031_v31, %v1013_v16  ;;  %v2898_v31 = vld [vmem:[%s3797_s7 + $0x48] sm:$0xff]  }
 0xf88   :  { %2955 = vtanh.f32 %v1033_v35 }
 0xf92   :  { %v2956_v42 = vpop.eup %2955 }
 0xf93   :  { %1037 = vrot.lane.b32.xlu0 %v2956_v42, %s3041_s24 }
 0xf97   :  { %1105 = vrot.lane.b32.xlu0 %v1103_v43, %s3041_s24 }
0x1005   :  { %v1038_v46 = vpop.permute.xlu0 %1037 }
0x1006   :  { %v1040_v52 = vmul.f32 %v1038_v46, %v1035_v45 }
0x1008   :  { %v3411_v53 = vadd.f32 %v1041_v51, %v1040_v52 }
0x1009   :  { %v1106_v41 = vpop.permute.xlu0 %1105 }
0x100a   :  { %v1043_v49 = vpack.c.bf16 %v3411_v53, %v3411_v53 }
0x100c   :  { %1045 = vrot.lane.b32.xlu1 %v1043_v49, %s3041_s24  ;;  %v3478_v49 = vld [vmem:[%s3790_s3] sm:$0xff]  }
0x107e   :  { %v1046_v55 = vpop.permute.xlu1 %1045 }
0x107f   :  { %2701 = vmatmul.mubr.msk.bf16.vlgmr.msra.gmra.mrb[36].mxu0 %vm237_vm3, %v1046_v55 }
0x1080   :  { %2705 = vmatpush3.bf16.msra.mxu0 %v3097_v1  ;;  %2708 = vmatprep.mubr.msk.bf16.mxu0 %vm3038_vm1, %v3037_v0 }
0x1081   :  { %2706 = vmatprep.subr.bf16.mxu0 %v3037_v0 }
0x1084   :  { %2707 = vmatpush3.bf16.msra.mxu0 %v3111_v4 }
0x1085   :  { %2724 = vmatprep.subr.bf16.mxu0 %v3037_v0 }
0x1087   :  { %2709 = vmatmul.mubr.msk.bf16.vlgmr.msra.gmra.mrb[40].mxu0 %vm237_vm3, %v1106_v41 }
0x1088   :  { %2728 = vmatprep.mubr.msk.bf16.mxu0 %vm3038_vm1, %v3037_v0 }
0x1152   :  { %v1096_v56 = vpop.f32.mrb[36].mxu0 }
0x1153   :  { %v3427_v24 = vadd.f32 %v1096_v56, %v3369_v48  ;;  %v2702_v1 = vpop.f32.mrb[37].mxu0 }
0x1154   :  { %v1099_v57 = vpop.f32.mrb[38].mxu0 }
0x1155   :  { %v2703_v58 = vpop.f32.mrb[39].mxu0 }
0x115a   :  { %v1144_v59 = vpop.f32.mrb[40].mxu0 }
0x115b   :  { %v1157_v60 = vadd.f32 %v1144_v59, %v3129_v9  ;;  %v2710_v61 = vpop.f32.mrb[41].mxu0  ;;  %v1150_v2 = vadd.f32 %v1144_v59, %v149_v63 }
0x115c   :  { %v1147_v4 = vpop.f32.mrb[42].mxu0 }
0x115d   :  { %1159 = vrot.lane.b32.xlu1 %v1157_v60, %s3039_s18  ;;  %v2711_v62 = vpop.f32.mrb[43].mxu0  ;;  %v2412_v3 = vmul.f32 -1.442695, %v1150_v2 }
0x115f   :  { %2957 = vpow2.f32 %v2412_v3 }
0x1169   :  { %v2958_v5 = vpop.eup %2957 }
0x116a   :  { %v1154_v48 = vadd.f32 1.0, %v2958_v5 }
0x116c   :  { %2959 = vrcp.f32 %v1154_v48 }
0x1176   :  { %v2960_v6 = vpop.eup %2959 }
0x1177   :  { %v1169_v13 = vsub.f32 1.0, %v2960_v6  ;;  %v1175_v18 = vmul.f32 %v2960_v6, %v3378_v12 }
0x11cf   :  { %v1160_v7 = vpop.permute.xlu1 %1159 }
0x11d0   :  { %v1162_v8 = vmul.f32 %v2960_v6, %v1160_v7 }
0x11d2   :  { %1164 = vrot.lane.b32.xlu0 %v1162_v8, %s3039_s18 }
0x1244   :  { %v1165_v10 = vpop.permute.xlu0 %1164 }
0x1245   :  { %v1167_v28 = vadd.f32 %v1165_v10, %v149_v63  ;;  %v3502_v63 = vld [vmem:[%s3794_s2] ss:$0 sm:$0xff] }
0x1247   :  { %2961 = vtanh.f32 %v1167_v28 }
0x1251   :  { %v2962_v11 = vpop.eup %2961 }
0x1252   :  { %1171 = vrot.lane.b32.xlu1 %v2962_v11, %s3041_s24 }
0x12c4   :  { %v1172_v14 = vpop.permute.xlu1 %1171 }
0x12c5   :  { %v1174_v34 = vmul.f32 %v1172_v14, %v1169_v13 }
0x12c7   :  { %v3436_v15 = vadd.f32 %v1175_v18, %v1174_v34 }
0x12c9   :  { %1178 = vrot.lane.b32.xlu0 %v3436_v15, %s3041_s24  ;;  %v1311_v37 = vpack.c.bf16 %v3436_v15, %v3436_v15 }
0x133b   :  { %v1179_v54 = vpop.permute.xlu0 %1178 }
0x133c   :  { %v1181_v16 = vsel %vm237_vm3, %v1179_v54, %v3411_v53 }
0x133d   :  { %v1182_v17 = vpack.c.bf16 %v1181_v16, %v1181_v16 }
0x133f   :  { %2721 = vmatmul.mubr.msk.bf16.vlgmr.msra.gmra.mrb[28].mxu1 %vm352_vm4, %v1182_v17 }
0x1340   :  { %2741 = vmatpush3.bf16.msra.mxu1 %v3145_v29  ;;  %2748 = vmatprep.mubr.msk.bf16.mxu1 %vm3038_vm1, %v3037_v0 }
0x1341   :  { %2742 = vmatprep.subr.bf16.mxu1 %v3037_v0 }
0x1344   :  { %2743 = vmatpush3.bf16.msra.mxu1 %v3151_v30 }
0x1345   :  { %2744 = vmatprep.subr.bf16.mxu1 %v3037_v0 }
0x1348   :  { %2745 = vmatpush3.bf16.msra.mxu1 %v3161_v32 }
0x1349   :  { %2746 = vmatprep.subr.bf16.mxu1 %v3037_v0 }
0x134c   :  { %2747 = vmatpush3.bf16.msra.mxu1 %v3170_v33 }
0x134d   :  { %2768 = vmatprep.subr.bf16.mxu1 %v3037_v0 }
0x1412   :  { %v1220_v12 = vpop.f32.mrb[28].mxu1 }
0x1413   :  { %v1221_v29 = vadd.f32 %v3200_v44, %v1220_v12  ;;  %v2722_v19 = vpop.f32.mrb[29].mxu1  ;;  %v2897_v44 = vld [vmem:[%s3797_s7 + $0x40] sm:$0xff]  }
0x1414   :  { %v1223_v20 = vpop.f32.mrb[30].mxu1  ;;  %2725 = vmatpush3.bf16.msra.mxu0 %v2897_v44  ;;  %v3519_v12 = vld [vmem:[%s3795_s5] sm:$0xff]   ;;  %v3542_v19 = vld [vmem:[%s3795_s5 + $0x18] sm:$0xff]  }
0x1415   :  { %1233 = vrot.lane.b32.xlu1 %v1221_v29, %s3042_s10  ;;  %v2723_v21 = vpop.f32.mrb[31].mxu1  ;;  %v2414_v22 = vmul.f32 -1.442695, %v1221_v29  ;;  %2726 = vmatprep.subr.bf16.mxu0 %v3037_v0 }
0x1416   :  { %v3549_v21 = vld [vmem:[%s3796_s6] ss:$0 sm:$0xff] }
0x1417   :  { %2963 = vpow2.f32 %v2414_v22 }
0x1418   :  { %2727 = vmatpush3.bf16.msra.mxu0 %v2898_v31 }
0x1419   :  { %2732 = vmatprep.subr.bf16.mxu0 %v3037_v0 }
0x1421   :  { %v2964_v30 = vpop.eup %2963 }
0x1422   :  { %v1229_v23 = vadd.f32 1.0, %v2964_v30 }
0x1424   :  { %2965 = vrcp.f32 %v1229_v23 }
0x142e   :  { %v2966_v32 = vpop.eup %2965 }
0x142f   :  { %v1243_v39 = vsub.f32 1.0, %v2966_v32  ;;  %v1249_v43 = vmul.f32 %v2966_v32, %v3411_v53  ;;  %v3487_v53 = vld [vmem:[%s3790_s3 + $0x8] sm:$0xff]  }
0x1487   :  { %v1234_v25 = vpop.permute.xlu1 %1233 }
0x1488   :  { %v1236_v26 = vmul.f32 %v2966_v32, %v1234_v25 }
0x148a   :  { %1238 = vrot.lane.b32.xlu0 %v1236_v26, %s3039_s18 }
0x14fc   :  { %v1239_v33 = vpop.permute.xlu0 %1238 }
0x14fd   :  { %v1241_v27 = vadd.f32 %v1239_v33, %v1221_v29  ;;  %v3535_v29 = vld [vmem:[%s3795_s5 + $0x10] sm:$0xff]  }
0x14ff   :  { %2967 = vtanh.f32 %v1241_v27 }
0x1509   :  { %v2968_v35 = vpop.eup %2967 }
0x150a   :  { %1245 = vrot.lane.b32.xlu1 %v2968_v35, %s3041_s24 }
0x150e   :  { %1313 = vrot.lane.b32.xlu1 %v1311_v37, %s3041_s24 }
0x157c   :  { %v1246_v42 = vpop.permute.xlu1 %1245 }
0x157d   :  { %v1248_v45 = vmul.f32 %v1246_v42, %v1243_v39  ;;  %v2899_v39 = vld [vmem:[%s3797_s7 + $0x50] sm:$0xff]   ;;  %v2900_v42 = vld [vmem:[%s3797_s7 + $0x58] sm:$0xff]  }
0x157f   :  { %v3469_v46 = vadd.f32 %v1249_v43, %v1248_v45 }
0x1580   :  { %v1314_v55 = vpop.permute.xlu1 %1313 }
0x1581   :  { %v1251_v51 = vpack.c.bf16 %v3469_v46, %v3469_v46 }
0x1583   :  { %1253 = vrot.lane.b32.xlu0 %v1251_v51, %s3041_s24 }
0x15f5   :  { %v1254_v52 = vpop.permute.xlu0 %1253 }
0x15f6   :  { %2729 = vmatmul.mubr.msk.bf16.vlgmr.msra.gmra.mrb[44].mxu0 %vm237_vm3, %v1254_v52 }
0x15f7   :  { %2733 = vmatpush3.bf16.msra.mxu0 %v3478_v49  ;;  %2736 = vmatprep.mubr.msk.bf16.mxu0 %vm3038_vm1, %v3037_v0 }
0x15f8   :  { %2734 = vmatprep.subr.bf16.mxu0 %v3037_v0 }
0x15fb   :  { %2735 = vmatpush3.bf16.msra.mxu0 %v3487_v53 }
0x15fc   :  { %2752 = vmatprep.subr.bf16.mxu0 %v3037_v0 }
0x15fe   :  { %2737 = vmatmul.mubr.msk.bf16.vlgmr.msra.gmra.mrb[48].mxu0 %vm237_vm3, %v1314_v55 }
0x15ff   :  { %2756 = vmatprep.mubr.msk.bf16.mxu0 %vm3038_vm1, %v3037_v0  ;;  %2753 = vmatpush3.bf16.msra.mxu0 %v2899_v39 }
0x1600   :  { %2754 = vmatprep.subr.bf16.mxu0 %v3037_v0 }
0x1603   :  { %2755 = vmatpush3.bf16.msra.mxu0 %v2900_v42 }
0x1604   :  { %2760 = vmatprep.subr.bf16.mxu0 %v3037_v0 }
0x16c9   :  { %v1304_v41 = vpop.f32.mrb[44].mxu0 }
0x16ca   :  { %v3495_v56 = vadd.f32 %v1304_v41, %v3427_v24  ;;  %v2730_v1 = vpop.f32.mrb[45].mxu0  ;;  %v152_v24 = vadd.f32 %v3502_v63, %v3248_v36 }
0x16cb   :  { %v1307_v57 = vpop.f32.mrb[46].mxu0 }
0x16cc   :  { %v2731_v58 = vpop.f32.mrb[47].mxu0 }
0x16d1   :  { %v1352_v59 = vpop.f32.mrb[48].mxu0 }
0x16d2   :  { %v1365_v60 = vadd.f32 %v1352_v59, %v3129_v9  ;;  %v2738_v61 = vpop.f32.mrb[49].mxu0  ;;  %v1358_v2 = vadd.f32 %v1352_v59, %v152_v24 }
0x16d3   :  { %v1355_v4 = vpop.f32.mrb[50].mxu0 }
0x16d4   :  { %1367 = vrot.lane.b32.xlu0 %v1365_v60, %s3039_s18  ;;  %v2739_v62 = vpop.f32.mrb[51].mxu0  ;;  %v2419_v3 = vmul.f32 -1.442695, %v1358_v2 }
0x16d6   :  { %2969 = vpow2.f32 %v2419_v3 }
0x16e0   :  { %v2970_v5 = vpop.eup %2969 }
0x16e1   :  { %v1362_v48 = vadd.f32 1.0, %v2970_v5 }
0x16e3   :  { %2971 = vrcp.f32 %v1362_v48 }
0x16ed   :  { %v2972_v6 = vpop.eup %2971 }
0x16ee   :  { %v1377_v13 = vsub.f32 1.0, %v2972_v6  ;;  %v1383_v36 = vmul.f32 %v2972_v6, %v3436_v15  ;;  %v3528_v15 = vld [vmem:[%s3795_s5 + $0x8] sm:$0xff]  }
0x1746   :  { %v1368_v7 = vpop.permute.xlu0 %1367 }
0x1747   :  { %v1370_v8 = vmul.f32 %v2972_v6, %v1368_v7  ;;  %v157_v6 = vadd.f32 %v3502_v63, %v3250_v38 }
0x1749   :  { %1372 = vrot.lane.b32.xlu1 %v1370_v8, %s3039_s18 }
0x17bb   :  { %v1373_v10 = vpop.permute.xlu1 %1372 }
0x17bc   :  { %v1375_v28 = vadd.f32 %v1373_v10, %v152_v24 }
0x17be   :  { %2973 = vtanh.f32 %v1375_v28 }
0x17c8   :  { %v2974_v11 = vpop.eup %2973 }
0x17c9   :  { %1379 = vrot.lane.b32.xlu0 %v2974_v11, %s3041_s24 }
0x183b   :  { %v1380_v14 = vpop.permute.xlu0 %1379 }
0x183c   :  { %v1382_v18 = vmul.f32 %v1380_v14, %v1377_v13 }
0x183e   :  { %v3509_v34 = vadd.f32 %v1383_v36, %v1382_v18 }
0x1840   :  { %1386 = vrot.lane.b32.xlu1 %v3509_v34, %s3041_s24  ;;  %v1519_v45 = vpack.c.bf16 %v3509_v34, %v3509_v34 }
0x18b2   :  { %v1387_v54 = vpop.permute.xlu1 %1386 }
0x18b3   :  { %v1389_v16 = vsel %vm237_vm3, %v1387_v54, %v3469_v46 }
0x18b4   :  { %v1390_v17 = vpack.c.bf16 %v1389_v16, %v1389_v16 }
0x18b6   :  { %2749 = vmatmul.mubr.msk.bf16.vlgmr.msra.gmra.mrb[32].mxu1 %vm352_vm4, %v1390_v17 }
0x18b7   :  { %2769 = vmatpush3.bf16.msra.mxu1 %v3519_v12  ;;  %2776 = vmatprep.mubr.msk.bf16.mxu1 %vm3038_vm1, %v3037_v0 }
0x18b8   :  { %2770 = vmatprep.subr.bf16.mxu1 %v3037_v0 }
0x18bb   :  { %2771 = vmatpush3.bf16.msra.mxu1 %v3528_v15 }
0x18bc   :  { %2772 = vmatprep.subr.bf16.mxu1 %v3037_v0 }
0x18bf   :  { %2773 = vmatpush3.bf16.msra.mxu1 %v3535_v29 }
0x18c0   :  { %2774 = vmatprep.subr.bf16.mxu1 %v3037_v0 }
0x18c3   :  { %2775 = vmatpush3.bf16.msra.mxu1 %v3542_v19 }
0x18c4   :  { %2796 = vmatprep.subr.bf16.mxu1 %v3037_v0 }
0x1989   :  { %v1428_v20 = vpop.f32.mrb[32].mxu1 }
0x198a   :  { %v1429_v22 = vadd.f32 %v3549_v21, %v1428_v20  ;;  %v2750_v30 = vpop.f32.mrb[33].mxu1 }
0x198b   :  { %v1431_v23 = vpop.f32.mrb[34].mxu1 }
0x198c   :  { %1441 = vrot.lane.b32.xlu0 %v1429_v22, %s3042_s10  ;;  %v2751_v32 = vpop.f32.mrb[35].mxu1  ;;  %v2421_v25 = vmul.f32 -1.442695, %v1429_v22 }
0x198e   :  { %2975 = vpow2.f32 %v2421_v25 }
0x1998   :  { %v2976_v26 = vpop.eup %2975 }
0x1999   :  { %v1437_v33 = vadd.f32 1.0, %v2976_v26 }
0x199b   :  { %2977 = vrcp.f32 %v1437_v33 }
0x19a5   :  { %v2978_v27 = vpop.eup %2977 }
0x19a6   :  { %v1451_v51 = vsub.f32 1.0, %v2978_v27  ;;  %v1457_v55 = vmul.f32 %v2978_v27, %v3469_v46 }
0x19fe   :  { %v1442_v44 = vpop.permute.xlu0 %1441 }
0x19ff   :  { %v1444_v31 = vmul.f32 %v2978_v27, %v1442_v44 }
0x1a01   :  { %1446 = vrot.lane.b32.xlu1 %v1444_v31, %s3039_s18 }
0x1a73   :  { %v1447_v35 = vpop.permute.xlu1 %1446 }
0x1a74   :  { %v1449_v37 = vadd.f32 %v1447_v35, %v1429_v22 }
0x1a76   :  { %2979 = vtanh.f32 %v1449_v37 }
0x1a80   :  { %v2980_v43 = vpop.eup %2979 }
0x1a81   :  { %1453 = vrot.lane.b32.xlu0 %v2980_v43, %s3041_s24 }
0x1a85   :  { %1521 = vrot.lane.b32.xlu0 %v1519_v45, %s3041_s24  ;;  %v2901_v45 = vld [vmem:[%s3797_s7 + $0x60] sm:$0xff]  }
0x1af3   :  { %v1454_v52 = vpop.permute.xlu0 %1453 }
0x1af4   :  { %v1456_v41 = vmul.f32 %v1454_v52, %v1451_v51  ;;  %v2902_v51 = vld [vmem:[%s3797_s7 + $0x68] sm:$0xff]  }
0x1af6   :  { %v3567_v1 = vadd.f32 %v1457_v55, %v1456_v41 }
0x1af7   :  { %v1522_v46 = vpop.permute.xlu0 %1521 }
0x1af8   :  { %v1459_v57 = vpack.c.bf16 %v3567_v1, %v3567_v1 }
0x1afa   :  { %1461 = vrot.lane.b32.xlu1 %v1459_v57, %s3041_s24 }
0x1b6c   :  { %v1462_v58 = vpop.permute.xlu1 %1461 }
0x1b6d   :  { %2757 = vmatmul.mubr.msk.bf16.vlgmr.msra.gmra.mrb[52].mxu0 %vm237_vm3, %v1462_v58 }
0x1b6e   :  { %2761 = vmatpush3.bf16.msra.mxu0 %v3478_v49  ;;  %2764 = vmatprep.mubr.msk.bf16.mxu0 %vm3038_vm1, %v3037_v0 }
0x1b6f   :  { %2762 = vmatprep.subr.bf16.mxu0 %v3037_v0 }
0x1b72   :  { %2763 = vmatpush3.bf16.msra.mxu0 %v3487_v53 }
0x1b73   :  { %2780 = vmatprep.subr.bf16.mxu0 %v3037_v0 }
0x1b75   :  { %2765 = vmatmul.mubr.msk.bf16.vlgmr.msra.gmra.mrb[56].mxu0 %vm237_vm3, %v1522_v46 }
0x1b76   :  { %2784 = vmatprep.mubr.msk.bf16.mxu0 %vm3038_vm1, %v3037_v0  ;;  %2781 = vmatpush3.bf16.msra.mxu0 %v2901_v45 }
0x1b77   :  { %2782 = vmatprep.subr.bf16.mxu0 %v3037_v0 }
0x1b7a   :  { %2783 = vmatpush3.bf16.msra.mxu0 %v2902_v51 }
0x1b7b   :  { %2788 = vmatprep.subr.bf16.mxu0 %v3037_v0 }
0x1c40   :  { %v1512_v59 = vpop.f32.mrb[52].mxu0 }
0x1c41   :  { %v3583_v60 = vadd.f32 %v1512_v59, %v3495_v56  ;;  %v2758_v61 = vpop.f32.mrb[53].mxu0 }
0x1c42   :  { %v1515_v4 = vpop.f32.mrb[54].mxu0 }
0x1c43   :  { %v2759_v62 = vpop.f32.mrb[55].mxu0 }
0x1c48   :  { %v1560_v24 = vpop.f32.mrb[56].mxu0 }
0x1c49   :  { %v1573_v2 = vadd.f32 %v1560_v24, %v3129_v9  ;;  %v2766_v3 = vpop.f32.mrb[57].mxu0  ;;  %v1566_v7 = vadd.f32 %v1560_v24, %v157_v6 }
0x1c4a   :  { %v1563_v5 = vpop.f32.mrb[58].mxu0 }
0x1c4b   :  { %1575 = vrot.lane.b32.xlu1 %v1573_v2, %s3039_s18  ;;  %v2767_v48 = vpop.f32.mrb[59].mxu0  ;;  %v2426_v8 = vmul.f32 -1.442695, %v1566_v7 }
0x1c4d   :  { %2981 = vpow2.f32 %v2426_v8 }
0x1c57   :  { %v2982_v10 = vpop.eup %2981 }
0x1c58   :  { %v1570_v56 = vadd.f32 1.0, %v2982_v10 }
0x1c5a   :  { %2983 = vrcp.f32 %v1570_v56  ;;  %v160_v56 = vadd.f32 %v3502_v63, %v3252_v40 }
0x1c64   :  { %v2984_v28 = vpop.eup %2983 }
0x1c65   :  { %v1585_v54 = vsub.f32 1.0, %v2984_v28  ;;  %v1591_v38 = vmul.f32 %v2984_v28, %v3509_v34 }
0x1cbd   :  { %v1576_v11 = vpop.permute.xlu1 %1575 }
0x1cbe   :  { %v1578_v13 = vmul.f32 %v2984_v28, %v1576_v11 }
0x1cc0   :  { %1580 = vrot.lane.b32.xlu0 %v1578_v13, %s3039_s18 }
0x1d32   :  { %v1581_v14 = vpop.permute.xlu0 %1580 }
0x1d33   :  { %v1583_v36 = vadd.f32 %v1581_v14, %v157_v6 }
0x1d35   :  { %2985 = vtanh.f32 %v1583_v36 }
0x1d3f   :  { %v2986_v18 = vpop.eup %2985 }
0x1d40   :  { %1587 = vrot.lane.b32.xlu1 %v2986_v18, %s3041_s24 }
0x1db2   :  { %v1588_v16 = vpop.permute.xlu1 %1587 }
0x1db3   :  { %v1590_v17 = vmul.f32 %v1588_v16, %v1585_v54 }
0x1db5   :  { %v3592_v20 = vadd.f32 %v1591_v38, %v1590_v17 }
0x1db7   :  { %1594 = vrot.lane.b32.xlu0 %v3592_v20, %s3041_s24  ;;  %v1727_v55 = vpack.c.bf16 %v3592_v20, %v3592_v20 }
0x1e29   :  { %v1595_v22 = vpop.permute.xlu0 %1594 }
0x1e2a   :  { %v1597_v30 = vsel %vm237_vm3, %v1595_v22, %v3567_v1 }
0x1e2b   :  { %v1598_v23 = vpack.c.bf16 %v1597_v30, %v1597_v30 }
0x1e2d   :  { %2777 = vmatmul.mubr.msk.bf16.vlgmr.msra.gmra.mrb[36].mxu1 %vm352_vm4, %v1598_v23 }
0x1e2e   :  { %2797 = vmatpush3.bf16.msra.mxu1 %v3519_v12  ;;  %2804 = vmatprep.mubr.msk.bf16.mxu1 %vm3038_vm1, %v3037_v0 }
0x1e2f   :  { %2798 = vmatprep.subr.bf16.mxu1 %v3037_v0 }
0x1e32   :  { %2799 = vmatpush3.bf16.msra.mxu1 %v3528_v15 }
0x1e33   :  { %2800 = vmatprep.subr.bf16.mxu1 %v3037_v0 }
0x1e36   :  { %2801 = vmatpush3.bf16.msra.mxu1 %v3535_v29 }
0x1e37   :  { %2802 = vmatprep.subr.bf16.mxu1 %v3037_v0 }
0x1e3a   :  { %2803 = vmatpush3.bf16.msra.mxu1 %v3542_v19 }
0x1e3b   :  { %2824 = vmatprep.subr.bf16.mxu1 %v3037_v0 }
0x1f00   :  { %v1636_v34 = vpop.f32.mrb[36].mxu1 }
0x1f01   :  { %v1637_v32 = vadd.f32 %v3549_v21, %v1636_v34  ;;  %v2778_v25 = vpop.f32.mrb[37].mxu1 }
0x1f02   :  { %v1639_v26 = vpop.f32.mrb[38].mxu1 }
0x1f03   :  { %1649 = vrot.lane.b32.xlu1 %v1637_v32, %s3042_s10  ;;  %v2779_v33 = vpop.f32.mrb[39].mxu1  ;;  %v2428_v27 = vmul.f32 -1.442695, %v1637_v32 }
0x1f05   :  { %2987 = vpow2.f32 %v2428_v27 }
0x1f0f   :  { %v2988_v44 = vpop.eup %2987 }
0x1f10   :  { %v1645_v31 = vadd.f32 1.0, %v2988_v44 }
0x1f12   :  { %2989 = vrcp.f32 %v1645_v31 }
0x1f1c   :  { %v2990_v35 = vpop.eup %2989 }
0x1f1d   :  { %v1659_v41 = vsub.f32 1.0, %v2990_v35  ;;  %v1665_v58 = vmul.f32 %v2990_v35, %v3567_v1 }
0x1f75   :  { %v1650_v37 = vpop.permute.xlu1 %1649 }
0x1f76   :  { %v1652_v39 = vmul.f32 %v2990_v35, %v1650_v37 }
0x1f78   :  { %1654 = vrot.lane.b32.xlu0 %v1652_v39, %s3039_s18 }
0x1fea   :  { %v1655_v42 = vpop.permute.xlu0 %1654 }
0x1feb   :  { %v1657_v43 = vadd.f32 %v1655_v42, %v1637_v32 }
0x1fed   :  { %2991 = vtanh.f32 %v1657_v43 }
0x1ff7   :  { %v2992_v52 = vpop.eup %2991 }
0x1ff8   :  { %1661 = vrot.lane.b32.xlu1 %v2992_v52, %s3041_s24  ;;  %v2903_v52 = vld [vmem:[%s3797_s7 + $0x70] sm:$0xff]  }
0x1ffc   :  { %1729 = vrot.lane.b32.xlu1 %v1727_v55, %s3041_s24  ;;  %v2904_v55 = vld [vmem:[%s3797_s7 + $0x78] sm:$0xff]  }
0x206a   :  { %v1662_v57 = vpop.permute.xlu1 %1661 }
0x206b   :  { %v1664_v46 = vmul.f32 %v1662_v57, %v1659_v41 }
0x206d   :  { %v3625_v59 = vadd.f32 %v1665_v58, %v1664_v46 }
0x206e   :  { %v1730_v1 = vpop.permute.xlu1 %1729 }
0x206f   :  { %v1667_v61 = vpack.c.bf16 %v3625_v59, %v3625_v59 }
0x2071   :  { %1669 = vrot.lane.b32.xlu0 %v1667_v61, %s3041_s24 }
0x20e3   :  { %v1670_v4 = vpop.permute.xlu0 %1669 }
0x20e4   :  { %2785 = vmatmul.mubr.msk.bf16.vlgmr.msra.gmra.mrb[60].mxu0 %vm237_vm3, %v1670_v4 }
0x20e5   :  { %2789 = vmatpush3.bf16.msra.mxu0 %v3478_v49  ;;  %2792 = vmatprep.mubr.msk.bf16.mxu0 %vm3038_vm1, %v3037_v0 }
0x20e6   :  { %2790 = vmatprep.subr.bf16.mxu0 %v3037_v0 }
0x20e9   :  { %2791 = vmatpush3.bf16.msra.mxu0 %v3487_v53 }
0x20ea   :  { %2808 = vmatprep.subr.bf16.mxu0 %v3037_v0 }
0x20ec   :  { %2793 = vmatmul.mubr.msk.bf16.vlgmr.msra.gmra.mrb[64].mxu0 %vm237_vm3, %v1730_v1 }
0x20ed   :  { %2812 = vmatprep.mubr.msk.bf16.mxu0 %vm3038_vm1, %v3037_v0  ;;  %2809 = vmatpush3.bf16.msra.mxu0 %v2903_v52 }
0x20ee   :  { %2810 = vmatprep.subr.bf16.mxu0 %v3037_v0 }
0x20f1   :  { %2811 = vmatpush3.bf16.msra.mxu0 %v2904_v55 }
0x20f2   :  { %2816 = vmatprep.subr.bf16.mxu0 %v3037_v0 }
0x21b7   :  { %v1720_v62 = vpop.f32.mrb[60].mxu0 }
0x21b8   :  { %v3641_v24 = vadd.f32 %v1720_v62, %v3583_v60  ;;  %v2786_v2 = vpop.f32.mrb[61].mxu0 }
0x21b9   :  { %v1723_v3 = vpop.f32.mrb[62].mxu0 }
0x21ba   :  { %v2787_v5 = vpop.f32.mrb[63].mxu0 }
0x21bf   :  { %v1768_v48 = vpop.f32.mrb[64].mxu0 }
0x21c0   :  { %v1781_v6 = vadd.f32 %v1768_v48, %v3129_v9  ;;  %v2794_v7 = vpop.f32.mrb[65].mxu0  ;;  %v1774_v28 = vadd.f32 %v1768_v48, %v160_v56 }
0x21c1   :  { %v1771_v8 = vpop.f32.mrb[66].mxu0 }
0x21c2   :  { %1783 = vrot.lane.b32.xlu0 %v1781_v6, %s3039_s18  ;;  %v2795_v10 = vpop.f32.mrb[67].mxu0  ;;  %v2433_v11 = vmul.f32 -1.442695, %v1774_v28 }
0x21c4   :  { %2993 = vpow2.f32 %v2433_v11 }
0x21ce   :  { %v2994_v13 = vpop.eup %2993 }
0x21cf   :  { %v1778_v60 = vadd.f32 1.0, %v2994_v13  ;;  %v165_v13 = vadd.f32 %v3502_v63, %v3254_v47 }
0x21d1   :  { %2995 = vrcp.f32 %v1778_v60 }
0x21db   :  { %v2996_v14 = vpop.eup %2995 }
0x21dc   :  { %v1793_v17 = vsub.f32 1.0, %v2996_v14  ;;  %v1799_v40 = vmul.f32 %v2996_v14, %v3592_v20 }
0x2234   :  { %v1784_v36 = vpop.permute.xlu0 %1783 }
0x2235   :  { %v1786_v18 = vmul.f32 %v2996_v14, %v1784_v36 }
0x2237   :  { %1788 = vrot.lane.b32.xlu1 %v1786_v18, %s3039_s18 }
0x22a9   :  { %v1789_v54 = vpop.permute.xlu1 %1788 }
0x22aa   :  { %v1791_v16 = vadd.f32 %v1789_v54, %v160_v56 }
0x22ac   :  { %2997 = vtanh.f32 %v1791_v16 }
0x22b6   :  { %v2998_v38 = vpop.eup %2997 }
0x22b7   :  { %1795 = vrot.lane.b32.xlu0 %v2998_v38, %s3041_s24 }
0x2329   :  { %v1796_v22 = vpop.permute.xlu0 %1795 }
0x232a   :  { %v1798_v30 = vmul.f32 %v1796_v22, %v1793_v17 }
0x232c   :  { %v3650_v23 = vadd.f32 %v1799_v40, %v1798_v30 }
0x232e   :  { %1802 = vrot.lane.b32.xlu1 %v3650_v23, %s3041_s24  ;;  %v1935_v57 = vpack.c.bf16 %v3650_v23, %v3650_v23 }
0x23a0   :  { %v1803_v34 = vpop.permute.xlu1 %1802 }
0x23a1   :  { %v1805_v32 = vsel %vm237_vm3, %v1803_v34, %v3625_v59 }
0x23a2   :  { %v1806_v25 = vpack.c.bf16 %v1805_v32, %v1805_v32 }
0x23a4   :  { %2805 = vmatmul.mubr.msk.bf16.vlgmr.msra.gmra.mrb[40].mxu1 %vm352_vm4, %v1806_v25 }
0x23a5   :  { %2825 = vmatpush3.bf16.msra.mxu1 %v3519_v12  ;;  %2832 = vmatprep.mubr.msk.bf16.mxu1 %vm3038_vm1, %v3037_v0 }
0x23a6   :  { %2826 = vmatprep.subr.bf16.mxu1 %v3037_v0 }
0x23a9   :  { %2827 = vmatpush3.bf16.msra.mxu1 %v3528_v15 }
0x23aa   :  { %2828 = vmatprep.subr.bf16.mxu1 %v3037_v0 }
0x23ad   :  { %2829 = vmatpush3.bf16.msra.mxu1 %v3535_v29 }
0x23ae   :  { %2830 = vmatprep.subr.bf16.mxu1 %v3037_v0 }
0x23b1   :  { %2831 = vmatpush3.bf16.msra.mxu1 %v3542_v19 }
0x23b2   :  { %2852 = vmatprep.subr.bf16.mxu1 %v3037_v0 }
0x2477   :  { %v1844_v20 = vpop.f32.mrb[40].mxu1 }
0x2478   :  { %v1845_v26 = vadd.f32 %v3549_v21, %v1844_v20  ;;  %v2806_v33 = vpop.f32.mrb[41].mxu1 }
0x2479   :  { %v1847_v27 = vpop.f32.mrb[42].mxu1 }
0x247a   :  { %1857 = vrot.lane.b32.xlu0 %v1845_v26, %s3042_s10  ;;  %v2807_v44 = vpop.f32.mrb[43].mxu1  ;;  %v2435_v31 = vmul.f32 -1.442695, %v1845_v26 }
0x247c   :  { %2999 = vpow2.f32 %v2435_v31 }
0x2486   :  { %v3000_v35 = vpop.eup %2999 }
0x2487   :  { %v1853_v37 = vadd.f32 1.0, %v3000_v35 }
0x2489   :  { %3001 = vrcp.f32 %v1853_v37 }
0x2493   :  { %v3002_v39 = vpop.eup %3001 }
0x2494   :  { %v1867_v58 = vsub.f32 1.0, %v3002_v39  ;;  %v1873_v61 = vmul.f32 %v3002_v39, %v3625_v59 }
0x24ec   :  { %v1858_v42 = vpop.permute.xlu0 %1857 }
0x24ed   :  { %v1860_v43 = vmul.f32 %v3002_v39, %v1858_v42 }
0x24ef   :  { %1862 = vrot.lane.b32.xlu1 %v1860_v43, %s3039_s18  ;;  %v2905_v43 = vld [vmem:[%s3797_s7 + $0x80] sm:$0xff]  }
0x2561   :  { %v1863_v45 = vpop.permute.xlu1 %1862 }
0x2562   :  { %v1865_v51 = vadd.f32 %v1863_v45, %v1845_v26  ;;  %v2906_v45 = vld [vmem:[%s3797_s7 + $0x88] sm:$0xff]  }
0x2564   :  { %3003 = vtanh.f32 %v1865_v51 }
0x256e   :  { %v3004_v41 = vpop.eup %3003 }
0x256f   :  { %1869 = vrot.lane.b32.xlu0 %v3004_v41, %s3041_s24 }
0x2573   :  { %1937 = vrot.lane.b32.xlu0 %v1935_v57, %s3041_s24 }
0x25e1   :  { %v1870_v46 = vpop.permute.xlu0 %1869 }
0x25e2   :  { %v1872_v4 = vmul.f32 %v1870_v46, %v1867_v58 }
0x25e4   :  { %v3683_v1 = vadd.f32 %v1873_v61, %v1872_v4 }
0x25e5   :  { %v1938_v59 = vpop.permute.xlu0 %1937 }
0x25e6   :  { %v1875_v62 = vpack.c.bf16 %v3683_v1, %v3683_v1 }
0x25e8   :  { %1877 = vrot.lane.b32.xlu1 %v1875_v62, %s3041_s24 }
0x265a   :  { %v1878_v2 = vpop.permute.xlu1 %1877 }
0x265b   :  { %2813 = vmatmul.mubr.msk.bf16.vlgmr.msra.gmra.mrb[68].mxu0 %vm237_vm3, %v1878_v2 }
0x265c   :  { %2817 = vmatpush3.bf16.msra.mxu0 %v3478_v49  ;;  %2820 = vmatprep.mubr.msk.bf16.mxu0 %vm3038_vm1, %v3037_v0 }
0x265d   :  { %2818 = vmatprep.subr.bf16.mxu0 %v3037_v0 }
0x2660   :  { %2819 = vmatpush3.bf16.msra.mxu0 %v3487_v53 }
0x2661   :  { %2836 = vmatprep.subr.bf16.mxu0 %v3037_v0 }
0x2663   :  { %2821 = vmatmul.mubr.msk.bf16.vlgmr.msra.gmra.mrb[72].mxu0 %vm237_vm3, %v1938_v59 }
0x2664   :  { %2840 = vmatprep.mubr.msk.bf16.mxu0 %vm3038_vm1, %v3037_v0  ;;  %2837 = vmatpush3.bf16.msra.mxu0 %v2905_v43 }
0x2665   :  { %2838 = vmatprep.subr.bf16.mxu0 %v3037_v0 }
0x2668   :  { %2839 = vmatpush3.bf16.msra.mxu0 %v2906_v45 }
0x2669   :  { %2844 = vmatprep.subr.bf16.mxu0 %v3037_v0 }
0x272e   :  { %v1928_v3 = vpop.f32.mrb[68].mxu0 }
0x272f   :  { %v3699_v5 = vadd.f32 %v1928_v3, %v3641_v24  ;;  %v2814_v48 = vpop.f32.mrb[69].mxu0 }
0x2730   :  { %v1931_v6 = vpop.f32.mrb[70].mxu0 }
0x2731   :  { %v2815_v7 = vpop.f32.mrb[71].mxu0 }
0x2736   :  { %v1976_v8 = vpop.f32.mrb[72].mxu0 }
0x2737   :  { %v1989_v10 = vadd.f32 %v1976_v8, %v3129_v9  ;;  %v2822_v56 = vpop.f32.mrb[73].mxu0  ;;  %v1982_v60 = vadd.f32 %v1976_v8, %v165_v13 }
0x2738   :  { %v1979_v28 = vpop.f32.mrb[74].mxu0 }
0x2739   :  { %1991 = vrot.lane.b32.xlu1 %v1989_v10, %s3039_s18  ;;  %v2823_v11 = vpop.f32.mrb[75].mxu0  ;;  %v2440_v14 = vmul.f32 -1.442695, %v1982_v60  ;;  %v168_v10 = vadd.f32 %v3502_v63, %v3258_v50 }
0x273b   :  { %3005 = vpow2.f32 %v2440_v14 }
0x2745   :  { %v3006_v36 = vpop.eup %3005 }
0x2746   :  { %v1986_v24 = vadd.f32 1.0, %v3006_v36 }
0x2748   :  { %3007 = vrcp.f32 %v1986_v24 }
0x2752   :  { %v3008_v18 = vpop.eup %3007 }
0x2753   :  { %v2001_v40 = vsub.f32 1.0, %v3008_v18  ;;  %v2007_v47 = vmul.f32 %v3008_v18, %v3650_v23 }
0x27ab   :  { %v1992_v54 = vpop.permute.xlu1 %1991 }
0x27ac   :  { %v1994_v16 = vmul.f32 %v3008_v18, %v1992_v54 }
0x27ae   :  { %1996 = vrot.lane.b32.xlu0 %v1994_v16, %s3039_s18 }
0x2820   :  { %v1997_v38 = vpop.permute.xlu0 %1996 }
0x2821   :  { %v1999_v17 = vadd.f32 %v1997_v38, %v165_v13 }
0x2823   :  { %3009 = vtanh.f32 %v1999_v17 }
0x282d   :  { %v3010_v22 = vpop.eup %3009 }
0x282e   :  { %2003 = vrot.lane.b32.xlu1 %v3010_v22, %s3041_s24 }
0x28a0   :  { %v2004_v30 = vpop.permute.xlu1 %2003 }
0x28a1   :  { %v2006_v34 = vmul.f32 %v2004_v30, %v2001_v40 }
0x28a3   :  { %v3708_v32 = vadd.f32 %v2007_v47, %v2006_v34 }
0x28a5   :  { %2010 = vrot.lane.b32.xlu0 %v3708_v32, %s3041_s24  ;;  %v2143_v52 = vpack.c.bf16 %v3708_v32, %v3708_v32 }
0x2917   :  { %v2011_v25 = vpop.permute.xlu0 %2010 }
0x2918   :  { %v2013_v20 = vsel %vm237_vm3, %v2011_v25, %v3683_v1 }
0x2919   :  { %v2014_v26 = vpack.c.bf16 %v2013_v20, %v2013_v20 }
0x291b   :  { %2833 = vmatmul.mubr.msk.bf16.vlgmr.msra.gmra.mrb[44].mxu1 %vm352_vm4, %v2014_v26 }
0x291c   :  { %2853 = vmatpush3.bf16.msra.mxu1 %v3519_v12  ;;  %2860 = vmatprep.mubr.msk.bf16.mxu1 %vm3038_vm1, %v3037_v0 }
0x291d   :  { %2854 = vmatprep.subr.bf16.mxu1 %v3037_v0 }
0x2920   :  { %2855 = vmatpush3.bf16.msra.mxu1 %v3528_v15 }
0x2921   :  { %2856 = vmatprep.subr.bf16.mxu1 %v3037_v0 }
0x2924   :  { %2857 = vmatpush3.bf16.msra.mxu1 %v3535_v29 }
0x2925   :  { %2858 = vmatprep.subr.bf16.mxu1 %v3037_v0 }
0x2928   :  { %2859 = vmatpush3.bf16.msra.mxu1 %v3542_v19 }
0x29ee   :  { %v2052_v23 = vpop.f32.mrb[44].mxu1 }
0x29ef   :  { %v2053_v33 = vadd.f32 %v3549_v21, %v2052_v23  ;;  %v2834_v27 = vpop.f32.mrb[45].mxu1 }
0x29f0   :  { %v2055_v12 = vpop.f32.mrb[46].mxu1 }
0x29f1   :  { %2065 = vrot.lane.b32.xlu1 %v2053_v33, %s3042_s10  ;;  %v2835_v44 = vpop.f32.mrb[47].mxu1  ;;  %v2442_v31 = vmul.f32 -1.442695, %v2053_v33 }
0x29f3   :  { %3011 = vpow2.f32 %v2442_v31  ;;  %v2908_v31 = vld [vmem:[%s3797_s7 + $0x98] sm:$0xff]  }
0x29fd   :  { %v3012_v35 = vpop.eup %3011 }
0x29fe   :  { %v2061_v15 = vadd.f32 1.0, %v3012_v35 }
0x2a00   :  { %3013 = vrcp.f32 %v2061_v15  ;;  %v14_v15 = vstv %s3798_s8 }
0x2a01   :  { %15 = vst [vmem:[#allocation2] sm:$0x1] %v14_v15 }
0x2a0a   :  { %v3014_v37 = vpop.eup %3013 }
0x2a0b   :  { %v2075_v55 = vsub.f32 1.0, %v3014_v37  ;;  %v2081_v57 = vmul.f32 %v3014_v37, %v3683_v1 }
0x2a63   :  { %v2066_v39 = vpop.permute.xlu1 %2065 }
0x2a64   :  { %v2068_v29 = vmul.f32 %v3014_v37, %v2066_v39 }
0x2a66   :  { %2070 = vrot.lane.b32.xlu0 %v2068_v29, %s3039_s18 }
0x2ad8   :  { %v2071_v42 = vpop.permute.xlu0 %2070 }
0x2ad9   :  { %v2073_v19 = vadd.f32 %v2071_v42, %v2053_v33 }
0x2adb   :  { %3015 = vtanh.f32 %v2073_v19 }
0x2ae5   :  { %v3016_v51 = vpop.eup %3015 }
0x2ae6   :  { %2077 = vrot.lane.b32.xlu1 %v3016_v51, %s3041_s24  ;;  %v2453_v51 = vld [vmem:[#allocation2] ss:$0 sm:$0xff] }
0x2aea   :  { %2145 = vrot.lane.b32.xlu1 %v2143_v52, %s3041_s24 }
0x2b58   :  { %v2078_v41 = vpop.permute.xlu1 %2077 }
0x2b59   :  { %v2080_v58 = vmul.f32 %v2078_v41, %v2075_v55 }
0x2b5b   :  { %v3740_v46 = vadd.f32 %v2081_v57, %v2080_v58 }
0x2b5c   :  { %v2146_v1 = vpop.permute.xlu1 %2145 }
0x2b5d   :  { %v2083_v61 = vpack.c.bf16 %v3740_v46, %v3740_v46 }
0x2b5f   :  { %2085 = vrot.lane.b32.xlu0 %v2083_v61, %s3041_s24 }
0x2bd1   :  { %v2086_v4 = vpop.permute.xlu0 %2085 }
0x2bd2   :  { %2841 = vmatmul.mubr.msk.bf16.vlgmr.msra.gmra.mrb[76].mxu0 %vm237_vm3, %v2086_v4 }
0x2bd3   :  { %2845 = vmatpush3.bf16.msra.mxu0 %v3478_v49  ;;  %2848 = vmatprep.mubr.msk.bf16.mxu0 %vm3038_vm1, %v3037_v0 }
0x2bd4   :  { %2846 = vmatprep.subr.bf16.mxu0 %v3037_v0 }
0x2bd7   :  { %2847 = vmatpush3.bf16.msra.mxu0 %v3487_v53 }
0x2bd8   :  { %2864 = vmatprep.subr.bf16.mxu0 %v3037_v0 }
0x2bda   :  { %2849 = vmatmul.mubr.msk.bf16.vlgmr.msra.gmra.mrb[80].mxu0 %vm237_vm3, %v2146_v1 }
0x2bdb   :  { %2868 = vmatprep.mubr.msk.bf16.mxu0 %vm3038_vm1, %v3037_v0 }
0x2ca5   :  { %v2136_v62 = vpop.f32.mrb[76].mxu0 }
0x2ca6   :  { %v3756_v2 = vadd.f32 %v2136_v62, %v3699_v5  ;;  %v2842_v49 = vpop.f32.mrb[77].mxu0 }
0x2ca7   :  { %v2139_v59 = vpop.f32.mrb[78].mxu0 }
0x2ca8   :  { %v2843_v3 = vpop.f32.mrb[79].mxu0 }
0x2cad   :  { %v2184_v48 = vpop.f32.mrb[80].mxu0 }
0x2cae   :  { %v2197_v6 = vadd.f32 %v2184_v48, %v3129_v9  ;;  %v2850_v7 = vpop.f32.mrb[81].mxu0  ;;  %v2190_v56 = vadd.f32 %v2184_v48, %v168_v10 }
0x2caf   :  { %v2187_v53 = vpop.f32.mrb[82].mxu0 }
0x2cb0   :  { %2199 = vrot.lane.b32.xlu0 %v2197_v6, %s3039_s18  ;;  %v2851_v8 = vpop.f32.mrb[83].mxu0  ;;  %v2447_v28 = vmul.f32 -1.442695, %v2190_v56 }
0x2cb2   :  { %3017 = vpow2.f32 %v2447_v28 }
0x2cbc   :  { %v3018_v11 = vpop.eup %3017 }
0x2cbd   :  { %v2194_v5 = vadd.f32 1.0, %v3018_v11 }
0x2cbf   :  { %3019 = vrcp.f32 %v2194_v5 }
0x2cc9   :  { %v3020_v13 = vpop.eup %3019 }
0x2cca   :  { %v2209_v18 = vsub.f32 1.0, %v3020_v13  ;;  %v2215_v50 = vmul.f32 %v3020_v13, %v3708_v32 }
0x2d22   :  { %v2200_v60 = vpop.permute.xlu0 %2199 }
0x2d23   :  { %v2202_v14 = vmul.f32 %v3020_v13, %v2200_v60 }
0x2d25   :  { %2204 = vrot.lane.b32.xlu1 %v2202_v14, %s3039_s18 }
0x2d97   :  { %v2205_v9 = vpop.permute.xlu1 %2204 }
0x2d98   :  { %v2207_v36 = vadd.f32 %v2205_v9, %v168_v10 }
0x2d9a   :  { %3021 = vtanh.f32 %v2207_v36 }
0x2da4   :  { %v3022_v24 = vpop.eup %3021 }
0x2da5   :  { %2211 = vrot.lane.b32.xlu0 %v3022_v24, %s3041_s24 }
0x2e17   :  { %v2212_v54 = vpop.permute.xlu0 %2211 }
0x2e18   :  { %v2214_v63 = vmul.f32 %v2212_v54, %v2209_v18 }
0x2e1a   :  { %v2216_v16 = vadd.f32 %v2215_v50, %v2214_v63 }
0x2e1c   :  { %2218 = vrot.lane.b32.xlu1 %v2216_v16, %s3041_s24 }
0x2e8e   :  { %v2219_v38 = vpop.permute.xlu1 %2218 }
0x2e8f   :  { %v2221_v17 = vsel %vm237_vm3, %v2219_v38, %v3740_v46 }
0x2e90   :  { %v2222_v22 = vpack.c.bf16 %v2221_v17, %v2221_v17 }
0x2e92   :  { %2861 = vmatmul.mubr.msk.bf16.vlgmr.msra.gmra.mrb[48].mxu1 %vm352_vm4, %v2222_v22 }
0x2f65   :  { %v2260_v40 = vpop.f32.mrb[48].mxu1 }
0x2f66   :  { %v2261_v30 = vadd.f32 %v3549_v21, %v2260_v40  ;;  %v2862_v47 = vpop.f32.mrb[49].mxu1  ;;  %v2907_v21 = vld [vmem:[%s3797_s7 + $0x90] sm:$0xff]  }
0x2f67   :  { %v2263_v34 = vpop.f32.mrb[50].mxu1  ;;  %2865 = vmatpush3.bf16.msra.mxu0 %v2907_v21 }
0x2f68   :  { %2273 = vrot.lane.b32.xlu0 %v2261_v30, %s3042_s10  ;;  %v2863_v25 = vpop.f32.mrb[51].mxu1  ;;  %v2449_v32 = vmul.f32 -1.442695, %v2261_v30  ;;  %2866 = vmatprep.subr.bf16.mxu0 %v3037_v0 }
0x2f6a   :  { %3023 = vpow2.f32 %v2449_v32 }
0x2f6b   :  { %2867 = vmatpush3.bf16.msra.mxu0 %v2908_v31 }
0x2f74   :  { %v3024_v20 = vpop.eup %3023 }
0x2f75   :  { %v2269_v26 = vadd.f32 1.0, %v3024_v20 }
0x2f77   :  { %3025 = vrcp.f32 %v2269_v26 }
0x2f81   :  { %v3026_v23 = vpop.eup %3025 }
0x2f82   :  { %v2283_v37 = vsub.f32 1.0, %v3026_v23  ;;  %v2289_v29 = vmul.f32 %v3026_v23, %v3740_v46 }
0x2fda   :  { %v2274_v33 = vpop.permute.xlu0 %2273 }
0x2fdb   :  { %v2276_v27 = vmul.f32 %v3026_v23, %v2274_v33 }
0x2fdd   :  { %2278 = vrot.lane.b32.xlu1 %v2276_v27, %s3039_s18 }
0x304f   :  { %v2279_v12 = vpop.permute.xlu1 %2278 }
0x3050   :  { %v2281_v44 = vadd.f32 %v2279_v12, %v2261_v30 }
0x3052   :  { %3027 = vtanh.f32 %v2281_v44 }
0x305c   :  { %v3028_v35 = vpop.eup %3027 }
0x305d   :  { %2285 = vrot.lane.b32.xlu0 %v3028_v35, %s3041_s24 }
0x30cf   :  { %v2286_v39 = vpop.permute.xlu0 %2285 }
0x30d0   :  { %v2288_v42 = vmul.f32 %v2286_v39, %v2283_v37 }
0x30d2   :  { %v2290_v19 = vadd.f32 %v2289_v29, %v2288_v42 }
0x30d4   :  { %v2291_v43 = vpack.c.bf16 %v2290_v19, %v2290_v19 }
0x30d6   :  { %2293 = vrot.lane.b32.xlu1 %v2291_v43, %s3041_s24 }
0x3148   :  { %v2294_v45 = vpop.permute.xlu1 %2293 }
0x3149   :  { %2869 = vmatmul.mubr.msk.bf16.vlgmr.msra.gmra.mrb[84].mxu0 %vm237_vm3, %v2294_v45 }
0x321c   :  { %v2344_v0 = vpop.f32.mrb[84].mxu0 }
0x321d   :  { %v2350_v52 = vadd.f32 %v2344_v0, %v3756_v2  ;;  %v2870_v55 = vpop.f32.mrb[85].mxu0 }
0x321e   :  { %v2347_v41 = vpop.f32.mrb[86].mxu0 }
0x321f   :  { %v2358_v57 = vadd.f32 %v2453_v51, %v2350_v52  ;;  %v2871_v58 = vpop.f32.mrb[87].mxu0 }
0x3221   :  { %2360 = vst.msk [vmem:[%s3799_s9] sm:$0xff] %vm2359_vm5, %v2358_v57 }

</bundles_post_ra>
